<compile_context>
chip_gen: v7x
topology: tpu7x:2x2x1
jax: 0.10.0
libtpu: 0.0.40
codegen_flags: <defaults>
</compile_context>

<pallas_src>
import functools

import jax
import jax.numpy as jnp
from jax import lax
from jax.experimental import pallas as pl
from jax.experimental.pallas import tpu as pltpu


# ----------------------------- fused Pallas kernel ---------------------------

def _bottleneck_kernel(H, TH,
                       xp_ref, w1_ref, w2_ref, w3_ref,
                       b1_ref, b2_ref, b3_ref,
                       o_ref):
    # xp_ref : (H+2, W, Cin)        f32   row-padded image, resident across strips
    # w1_ref : (Cin, width)         bf16  conv1 weights (BN1 scale folded)
    # w2_ref : (3, 3*width, width)  bf16  conv2 weights, (kw,ci) folded into K (BN2 scale folded)
    # w3_ref : (width, Cout)        bf16  conv3 weights (BN3 scale folded)
    # b*_ref : (1, C)               f32   folded BN biases
    # o_ref  : (TH, W, Cout)        f32   output row-strip
    W = o_ref.shape[1]
    width = w3_ref.shape[0]

    h = pl.program_id(1)
    start = pl.multiple_of(h * TH, TH)            # first padded row of this strip

    # ---- stage 1: 1x1 conv + bias + relu over TH+2 rows (1-row halo each side) ----
    x1 = xp_ref[pl.ds(start, TH + 2), :, :].astype(jnp.bfloat16)     # (TH+2, W, Cin)
    acc1 = lax.dot_general(x1, w1_ref[...],
                           dimension_numbers=(((2,), (0,)), ((), ())),
                           preferred_element_type=jnp.float32)
    o1 = jnp.maximum(acc1 + b1_ref[...], 0.0)                        # (TH+2, W, width) f32
    # Halo rows falling on the image's zero padding must be zero: conv2's pad=1
    # applies to relu(bn1(conv1(x))), not to bn1 of a zero input.
    prow = start + lax.broadcasted_iota(jnp.int32, (TH + 2, 1, 1), 0)
    o1 = jnp.where(jnp.logical_and(prow >= 1, prow <= H), o1, 0.0)

    # ---- kw tap-fold: +-1 column-shifted views via roll (XLU) + border mask ----
    col = lax.broadcasted_iota(jnp.int32, (1, W, 1), 1)
    o1_m = jnp.where(col >= 1, pltpu.roll(o1, 1, axis=1), 0.0)          # tap at w-1
    o1_p = jnp.where(col <= W - 2, pltpu.roll(o1, W - 1, axis=1), 0.0)  # tap at w+1
    o1c = jnp.concatenate([o1_m, o1, o1_p], axis=-1).astype(jnp.bfloat16)  # (TH+2, W, 3*width)

    # ---- stage 2: 3x3 conv (stride 1, pad 1) as 3 dots with K=3*width ----
    acc2 = jnp.zeros((TH, W, width), jnp.float32)
    for kh in range(3):
        acc2 = acc2 + lax.dot_general(
            o1c[kh:kh + TH], w2_ref[kh],
            dimension_numbers=(((2,), (0,)), ((), ())),
            preferred_element_type=jnp.float32)
    o2 = jnp.maximum(acc2 + b2_ref[...], 0.0).astype(jnp.bfloat16)    # (TH, W, width)

    # ---- stage 3: 1x1 conv + bias + residual add + relu ----
    acc3 = lax.dot_general(o2, w3_ref[...],
                           dimension_numbers=(((2,), (0,)), ((), ())),
                           preferred_element_type=jnp.float32)        # (TH, W, Cout)
    res = xp_ref[pl.ds(start + 1, TH), :, :]                          # f32 residual strip
    o_ref[...] = jnp.maximum(acc3 + b3_ref[...] + res, 0.0).astype(o_ref.dtype)


# ----------------------------- parameters / glue -----------------------------

def fold_bn(gamma, beta, mean, var, eps=1e-5):
    scale = gamma / jnp.sqrt(var + eps)
    bias = beta - mean * scale
    return scale.astype(jnp.float32), bias.astype(jnp.float32)


def init_params(key, inplanes, planes, base_width=64, groups=1):
    width = int(planes * (base_width / 64.0)) * groups
    out_ch = planes * 4  # expansion = 4
    ks = jax.random.split(key, 15)

    def bn_params(kg, kb, km, kv, c):
        gamma = jax.random.uniform(kg, (c,), jnp.float32, 0.5, 1.5)
        beta = jax.random.normal(kb, (c,), jnp.float32) * 0.1
        mean = jax.random.normal(km, (c,), jnp.float32) * 0.1
        var = jax.random.uniform(kv, (c,), jnp.float32, 0.5, 1.5)
        return gamma, beta, mean, var

    # Conv weights in PyTorch layout (Cout, Cin, kh, kw).
    return {
        "w1": jax.random.normal(ks[0], (width, inplanes, 1, 1), jnp.float32) * 0.1,
        "w2": jax.random.normal(ks[1], (width, width, 3, 3), jnp.float32) * 0.1,
        "w3": jax.random.normal(ks[2], (out_ch, width, 1, 1), jnp.float32) * 0.1,
        "bn1": bn_params(ks[3], ks[4], ks[5], ks[6], width),
        "bn2": bn_params(ks[7], ks[8], ks[9], ks[10], width),
        "bn3": bn_params(ks[11], ks[12], ks[13], ks[14], out_ch),
    }


def bottleneck_forward(x_nchw, p, row_tile=None):
    """Bottleneck forward, fused into a single Pallas kernel. NCHW in/out."""
    x = jnp.transpose(x_nchw, (0, 2, 3, 1)).astype(jnp.float32)   # -> NHWC
    N, H, W, Cin = x.shape

    s1, b1 = fold_bn(*p["bn1"])
    s2, b2 = fold_bn(*p["bn2"])
    s3, b3 = fold_bn(*p["bn3"])

    # Fold BN scales into conv weights in f32, THEN cast to bf16 for the MXU.
    w1 = (jnp.transpose(p["w1"][:, :, 0, 0], (1, 0)) * s1[None, :]).astype(jnp.bfloat16)   # (Cin, width)
    w2 = jnp.transpose(p["w2"], (2, 3, 1, 0)) * s2[None, None, None, :]                    # (3,3,width,width)
    width = w2.shape[2]
    w2 = w2.reshape(3, 3 * width, width).astype(jnp.bfloat16)                              # (3, 3*width, width)
    w3 = (jnp.transpose(p["w3"][:, :, 0, 0], (1, 0)) * s3[None, :]).astype(jnp.bfloat16)   # (width, Cout)
    Cout = w3.shape[1]
    assert Cout == Cin, "identity add requires inplanes == planes * expansion (downsample=None)"

    b1 = b1.reshape(1, -1)
    b2 = b2.reshape(1, -1)
    b3 = b3.reshape(1, -1)

    # Row-strip height: full image by default (grid-step overhead dominates here).
    TH = H if (row_tile is None or H % row_tile != 0) else row_tile
    xp = jnp.pad(x, ((0, 0), (1, 1), (0, 0), (0, 0)))   # pad ROWS only (1x1 conv needs no W halo)

    flops = 2 * N * H * W * (Cin * width + 9 * width * width + width * Cout)
    bytes_accessed = (xp.size + N * H * W * Cout) * 4 + (w1.size + w2.size + w3.size) * 2

    kernel = functools.partial(_bottleneck_kernel, H, TH)
    vec_spec = lambda c: pl.BlockSpec((1, c), lambda n, h: (0, 0))

    out = pl.pallas_call(
        kernel,
        grid=(N, H // TH),
        out_shape=jax.ShapeDtypeStruct((N, H, W, Cout), jnp.float32),
        in_specs=[
            # Full row-padded image; index_map ignores h -> stays resident across strips.
            pl.BlockSpec((None, H + 2, W, Cin), lambda n, h: (n, 0, 0, 0)),
            # Weights / biases: tiny, constant block index -> fetched once.
            pl.BlockSpec((Cin, width), lambda n, h: (0, 0)),
            pl.BlockSpec((3, 3 * width, width), lambda n, h: (0, 0, 0)),
            pl.BlockSpec((width, Cout), lambda n, h: (0, 0)),
            vec_spec(width), vec_spec(width), vec_spec(Cout),
        ],
        out_specs=pl.BlockSpec((None, TH, W, Cout), lambda n, h: (n, h, 0, 0)),
        compiler_params=pltpu.CompilerParams(
            dimension_semantics=("parallel", "parallel"),
            vmem_limit_bytes=32 * 1024 * 1024),
        cost_estimate=pl.CostEstimate(flops=flops, transcendentals=0,
                                      bytes_accessed=bytes_accessed),
    )(xp, w1, w2, w3, b1, b2, b3)

    return jnp.transpose(out, (0, 3, 1, 2))            # -> NCHW


# ----------------------------- pure-JAX reference ----------------------------
# Same precision policy as the kernel: BN scales folded into f32 weights before
# the bf16 cast, bf16 conv inputs, f32 accumulation, f32 bias/relu/residual.

def _conv_nhwc_bf16(x, w_hwio_bf16, padding):
    return lax.conv_general_dilated(x.astype(jnp.bfloat16), w_hwio_bf16, (1, 1), padding,
                                    dimension_numbers=("NHWC", "HWIO", "NHWC"),
                                    preferred_element_type=jnp.float32)


def reference(x_nchw, p):
    x = jnp.transpose(x_nchw, (0, 2, 3, 1)).astype(jnp.float32)
    s1, b1 = fold_bn(*p["bn1"])
    s2, b2 = fold_bn(*p["bn2"])
    s3, b3 = fold_bn(*p["bn3"])
    w1 = (jnp.transpose(p["w1"], (2, 3, 1, 0)) * s1).astype(jnp.bfloat16)   # HWIO
    w2 = (jnp.transpose(p["w2"], (2, 3, 1, 0)) * s2).astype(jnp.bfloat16)
    w3 = (jnp.transpose(p["w3"], (2, 3, 1, 0)) * s3).astype(jnp.bfloat16)
    o = jnp.maximum(_conv_nhwc_bf16(x, w1, "VALID") + b1, 0.0)
    o = jnp.maximum(_conv_nhwc_bf16(o, w2, "SAME") + b2, 0.0)
    o = jnp.maximum(_conv_nhwc_bf16(o, w3, "VALID") + b3 + x, 0.0)
    return jnp.transpose(o, (0, 3, 1, 2))


# ----------------------------- main -------------------------------------------

if __name__ == "__main__":
    key = jax.random.PRNGKey(0)
    # inplanes = planes*4 = 128 -> lane-dense output channels; width = 32.
    inplanes, planes = 128, 32
    N, H, W = 2, 16, 16
    kx, kp = jax.random.split(key)
    x = jax.random.normal(kx, (N, inplanes, H, W), jnp.float32)   # NCHW like PyTorch
    params = init_params(kp, inplanes, planes)

    out = jax.block_until_ready(bottleneck_forward(x, params))
    ref = jax.block_until_ready(reference(x, params))

    err = float(jnp.max(jnp.abs(out - ref)))
    assert out.shape == (N, planes * 4, H, W), out.shape
    assert err < 5e-3, f"max abs error {err}"
    print("KERNEL_OK")
</pallas_src>

<mosaic_0001>
module attributes {stable_mosaic.version = 11 : i64} {
  func.func @_bottleneck_kernel(%arg0: i32, %arg1: i32, %arg2: memref<1x18x16x128xf32, #tpu.memory_space<vmem>>, %arg3: memref<128x32xbf16, #tpu.memory_space<vmem>>, %arg4: memref<3x96x32xbf16, #tpu.memory_space<vmem>>, %arg5: memref<32x128xbf16, #tpu.memory_space<vmem>>, %arg6: memref<1x32xf32, #tpu.memory_space<vmem>>, %arg7: memref<1x32xf32, #tpu.memory_space<vmem>>, %arg8: memref<1x128xf32, #tpu.memory_space<vmem>>, %arg9: memref<1x16x16x128xf32, #tpu.memory_space<vmem>>) attributes {dimension_semantics = [#tpu.dimension_semantics<parallel>, #tpu.dimension_semantics<parallel>], iteration_bounds = array<i64: 2, 1>, scalar_prefetch = 0 : i64, scratch_operands = 0 : i64, tpu.core_type = #tpu.core_type<tc>, window_params = [{transform_indices = @transform_0, window_bounds = array<i64: 1, 18, 16, 128>}, {pipeline_mode = #tpu.pipeline_mode<synchronous>, transform_indices = @transform_1, window_bounds = array<i64: 128, 32>}, {pipeline_mode = #tpu.pipeline_mode<synchronous>, transform_indices = @transform_2, window_bounds = array<i64: 3, 96, 32>}, {pipeline_mode = #tpu.pipeline_mode<synchronous>, transform_indices = @transform_3, window_bounds = array<i64: 32, 128>}, {pipeline_mode = #tpu.pipeline_mode<synchronous>, transform_indices = @transform_4, window_bounds = array<i64: 1, 32>}, {pipeline_mode = #tpu.pipeline_mode<synchronous>, transform_indices = @transform_5, window_bounds = array<i64: 1, 32>}, {pipeline_mode = #tpu.pipeline_mode<synchronous>, transform_indices = @transform_6, window_bounds = array<i64: 1, 128>}, {transform_indices = @transform_7, window_bounds = array<i64: 1, 16, 16, 128>}]} {
    %c16_i32 = arith.constant 16 : i32
    %0 = arith.muli %arg1, %c16_i32 : i32
    %1 = tpu.assume_multiple %0, 16 : i32
    %c0 = arith.constant 0 : index
    %2 = arith.index_cast %1 : i32 to index
    %c0_0 = arith.constant 0 : index
    %c0_1 = arith.constant 0 : index
    %3 = vector.load %arg2[%c0, %2, %c0_0, %c0_1] : memref<1x18x16x128xf32, #tpu.memory_space<vmem>>, vector<1x18x16x128xf32>
    %4 = vector.shape_cast %3 : vector<1x18x16x128xf32> to vector<18x16x128xf32>
    %5 = arith.truncf %4 : vector<18x16x128xf32> to vector<18x16x128xbf16>
    %c0_2 = arith.constant 0 : index
    %c0_3 = arith.constant 0 : index
    %6 = vector.load %arg3[%c0_2, %c0_3] : memref<128x32xbf16, #tpu.memory_space<vmem>>, vector<128x32xbf16>
    %cst = arith.constant dense<0.000000e+00> : vector<18x16x32xf32>
    %7 = tpu.matmul %5, %6, %cst {dimension_numbers = #tpu.dot_dimension_numbers<[2], [0], [0, 1], [1], [0, 0, 0, 1, 1, 1], [], []>} : vector<18x16x128xbf16>, vector<128x32xbf16>, vector<18x16x32xf32> -> vector<18x16x32xf32>
    %c0_4 = arith.constant 0 : index
    %c0_5 = arith.constant 0 : index
    %8 = vector.load %arg6[%c0_4, %c0_5] : memref<1x32xf32, #tpu.memory_space<vmem>>, vector<1x32xf32>
    %9 = vector.shape_cast %8 : vector<1x32xf32> to vector<1x1x32xf32>
    %10 = vector.broadcast %9 : vector<1x1x32xf32> to vector<18x16x32xf32>
    %11 = arith.addf %7, %10 : vector<18x16x32xf32>
    %cst_6 = arith.constant 0.000000e+00 : f32
    %12 = vector.broadcast %cst_6 : f32 to vector<18x16x32xf32>
    %13 = arith.maximumf %11, %12 : vector<18x16x32xf32>
    %14 = tpu.iota {dimensions = array<i32: 0>} : vector<18x1x1xi32>
    %15 = vector.broadcast %1 : i32 to vector<18x1x1xi32>
    %16 = arith.addi %15, %14 : vector<18x1x1xi32>
    %c1_i32 = arith.constant 1 : i32
    %17 = vector.broadcast %c1_i32 : i32 to vector<18x1x1xi32>
    %18 = arith.cmpi sge, %16, %17 : vector<18x1x1xi32>
    %c16_i32_7 = arith.constant 16 : i32
    %19 = vector.broadcast %c16_i32_7 : i32 to vector<18x1x1xi32>
    %20 = arith.cmpi sle, %16, %19 : vector<18x1x1xi32>
    %21 = arith.andi %18, %20 : vector<18x1x1xi1>
    %cst_8 = arith.constant 0.000000e+00 : f32
    %22 = vector.shape_cast %21 : vector<18x1x1xi1> to vector<18x1x1xi1>
    %23 = vector.broadcast %22 : vector<18x1x1xi1> to vector<18x16x32xi1>
    %24 = vector.broadcast %cst_8 : f32 to vector<18x16x32xf32>
    %25 = arith.select %23, %13, %24 : vector<18x16x32xi1>, vector<18x16x32xf32>
    %26 = tpu.iota {dimensions = array<i32: 1>} : vector<1x16x1xi32>
    %c1_i32_9 = arith.constant 1 : i32
    %27 = vector.broadcast %c1_i32_9 : i32 to vector<1x16x1xi32>
    %28 = arith.cmpi sge, %26, %27 : vector<1x16x1xi32>
    %c1_i32_10 = arith.constant 1 : i32
    %29 = tpu.dynamic_rotate %25 by %c1_i32_10 dim 1 : vector<18x16x32xf32>, i32 -> vector<18x16x32xf32>
    %cst_11 = arith.constant 0.000000e+00 : f32
    %30 = vector.shape_cast %28 : vector<1x16x1xi1> to vector<1x16x1xi1>
    %31 = vector.broadcast %30 : vector<1x16x1xi1> to vector<18x16x32xi1>
    %32 = vector.broadcast %cst_11 : f32 to vector<18x16x32xf32>
    %33 = arith.select %31, %29, %32 : vector<18x16x32xi1>, vector<18x16x32xf32>
    %c14_i32 = arith.constant 14 : i32
    %34 = vector.broadcast %c14_i32 : i32 to vector<1x16x1xi32>
    %35 = arith.cmpi sle, %26, %34 : vector<1x16x1xi32>
    %c15_i32 = arith.constant 15 : i32
    %36 = tpu.dynamic_rotate %25 by %c15_i32 dim 1 : vector<18x16x32xf32>, i32 -> vector<18x16x32xf32>
    %cst_12 = arith.constant 0.000000e+00 : f32
    %37 = vector.shape_cast %35 : vector<1x16x1xi1> to vector<1x16x1xi1>
    %38 = vector.broadcast %37 : vector<1x16x1xi1> to vector<18x16x32xi1>
    %39 = vector.broadcast %cst_12 : f32 to vector<18x16x32xf32>
    %40 = arith.select %38, %36, %39 : vector<18x16x32xi1>, vector<18x16x32xf32>
    %41 = tpu.concatenate %33, %25, %40 in 2 : vector<18x16x32xf32>, vector<18x16x32xf32>, vector<18x16x32xf32> -> vector<18x16x96xf32>
    %42 = arith.truncf %41 : vector<18x16x96xf32> to vector<18x16x96xbf16>
    %cst_13 = arith.constant 0.000000e+00 : f32
    %43 = vector.broadcast %cst_13 : f32 to vector<16x16x32xf32>
    %44 = vector.extract_strided_slice %42 {offsets = [0, 0, 0], sizes = [16, 16, 96], strides = [1, 1, 1]} : vector<18x16x96xbf16> to vector<16x16x96xbf16>
    %c0_14 = arith.constant 0 : index
    %c0_15 = arith.constant 0 : index
    %c0_16 = arith.constant 0 : index
    %45 = vector.load %arg4[%c0_14, %c0_15, %c0_16] : memref<3x96x32xbf16, #tpu.memory_space<vmem>>, vector<1x96x32xbf16>
    %46 = vector.shape_cast %45 : vector<1x96x32xbf16> to vector<96x32xbf16>
    %cst_17 = arith.constant dense<0.000000e+00> : vector<16x16x32xf32>
    %47 = tpu.matmul %44, %46, %cst_17 {dimension_numbers = #tpu.dot_dimension_numbers<[2], [0], [0, 1], [1], [0, 0, 0, 1, 1, 1], [], []>} : vector<16x16x96xbf16>, vector<96x32xbf16>, vector<16x16x32xf32> -> vector<16x16x32xf32>
    %48 = arith.addf %43, %47 : vector<16x16x32xf32>
    %49 = vector.extract_strided_slice %42 {offsets = [1, 0, 0], sizes = [16, 16, 96], strides = [1, 1, 1]} : vector<18x16x96xbf16> to vector<16x16x96xbf16>
    %c1 = arith.constant 1 : index
    %c0_18 = arith.constant 0 : index
    %c0_19 = arith.constant 0 : index
    %50 = vector.load %arg4[%c1, %c0_18, %c0_19] : memref<3x96x32xbf16, #tpu.memory_space<vmem>>, vector<1x96x32xbf16>
    %51 = vector.shape_cast %50 : vector<1x96x32xbf16> to vector<96x32xbf16>
    %cst_20 = arith.constant dense<0.000000e+00> : vector<16x16x32xf32>
    %52 = tpu.matmul %49, %51, %cst_20 {dimension_numbers = #tpu.dot_dimension_numbers<[2], [0], [0, 1], [1], [0, 0, 0, 1, 1, 1], [], []>} : vector<16x16x96xbf16>, vector<96x32xbf16>, vector<16x16x32xf32> -> vector<16x16x32xf32>
    %53 = arith.addf %48, %52 : vector<16x16x32xf32>
    %54 = vector.extract_strided_slice %42 {offsets = [2, 0, 0], sizes = [16, 16, 96], strides = [1, 1, 1]} : vector<18x16x96xbf16> to vector<16x16x96xbf16>
    %c2 = arith.constant 2 : index
    %c0_21 = arith.constant 0 : index
    %c0_22 = arith.constant 0 : index
    %55 = vector.load %arg4[%c2, %c0_21, %c0_22] : memref<3x96x32xbf16, #tpu.memory_space<vmem>>, vector<1x96x32xbf16>
    %56 = vector.shape_cast %55 : vector<1x96x32xbf16> to vector<96x32xbf16>
    %cst_23 = arith.constant dense<0.000000e+00> : vector<16x16x32xf32>
    %57 = tpu.matmul %54, %56, %cst_23 {dimension_numbers = #tpu.dot_dimension_numbers<[2], [0], [0, 1], [1], [0, 0, 0, 1, 1, 1], [], []>} : vector<16x16x96xbf16>, vector<96x32xbf16>, vector<16x16x32xf32> -> vector<16x16x32xf32>
    %58 = arith.addf %53, %57 : vector<16x16x32xf32>
    %c0_24 = arith.constant 0 : index
    %c0_25 = arith.constant 0 : index
    %59 = vector.load %arg7[%c0_24, %c0_25] : memref<1x32xf32, #tpu.memory_space<vmem>>, vector<1x32xf32>
    %60 = vector.shape_cast %59 : vector<1x32xf32> to vector<1x1x32xf32>
    %61 = vector.broadcast %60 : vector<1x1x32xf32> to vector<16x16x32xf32>
    %62 = arith.addf %58, %61 : vector<16x16x32xf32>
    %cst_26 = arith.constant 0.000000e+00 : f32
    %63 = vector.broadcast %cst_26 : f32 to vector<16x16x32xf32>
    %64 = arith.maximumf %62, %63 : vector<16x16x32xf32>
    %65 = arith.truncf %64 : vector<16x16x32xf32> to vector<16x16x32xbf16>
    %c0_27 = arith.constant 0 : index
    %c0_28 = arith.constant 0 : index
    %66 = vector.load %arg5[%c0_27, %c0_28] : memref<32x128xbf16, #tpu.memory_space<vmem>>, vector<32x128xbf16>
    %cst_29 = arith.constant dense<0.000000e+00> : vector<16x16x128xf32>
    %67 = tpu.matmul %65, %66, %cst_29 {dimension_numbers = #tpu.dot_dimension_numbers<[2], [0], [0, 1], [1], [0, 0, 0, 1, 1, 1], [], []>} : vector<16x16x32xbf16>, vector<32x128xbf16>, vector<16x16x128xf32> -> vector<16x16x128xf32>
    %c1_i32_30 = arith.constant 1 : i32
    %68 = arith.addi %1, %c1_i32_30 : i32
    %c0_31 = arith.constant 0 : index
    %69 = arith.index_cast %68 : i32 to index
    %c0_32 = arith.constant 0 : index
    %c0_33 = arith.constant 0 : index
    %70 = vector.load %arg2[%c0_31, %69, %c0_32, %c0_33] : memref<1x18x16x128xf32, #tpu.memory_space<vmem>>, vector<1x16x16x128xf32>
    %71 = vector.shape_cast %70 : vector<1x16x16x128xf32> to vector<16x16x128xf32>
    %c0_34 = arith.constant 0 : index
    %c0_35 = arith.constant 0 : index
    %72 = vector.load %arg8[%c0_34, %c0_35] : memref<1x128xf32, #tpu.memory_space<vmem>>, vector<1x128xf32>
    %73 = vector.shape_cast %72 : vector<1x128xf32> to vector<1x1x128xf32>
    %74 = vector.broadcast %73 : vector<1x1x128xf32> to vector<16x16x128xf32>
    %75 = arith.addf %67, %74 : vector<16x16x128xf32>
    %76 = arith.addf %75, %71 : vector<16x16x128xf32>
    %cst_36 = arith.constant 0.000000e+00 : f32
    %77 = vector.broadcast %cst_36 : f32 to vector<16x16x128xf32>
    %78 = arith.maximumf %76, %77 : vector<16x16x128xf32>
    %c0_37 = arith.constant 0 : index
    %c0_38 = arith.constant 0 : index
    %c0_39 = arith.constant 0 : index
    %c0_40 = arith.constant 0 : index
    %79 = vector.load %arg9[%c0_37, %c0_38, %c0_39, %c0_40] : memref<1x16x16x128xf32, #tpu.memory_space<vmem>>, vector<1x16x16x128xf32>
    %80 = vector.shape_cast %79 : vector<1x16x16x128xf32> to vector<16x16x128xf32>
    %81 = vector.shape_cast %78 : vector<16x16x128xf32> to vector<1x16x16x128xf32>
    tpu.vector_store %arg9[%c0_37, %c0_38, %c0_39, %c0_40], %81 {strides = array<i32>} : memref<1x16x16x128xf32, #tpu.memory_space<vmem>>, vector<1x16x16x128xf32>,
    return
  }
  func.func @transform_0(%arg0: i32, %arg1: i32) -> (i32, i32, i32, i32) {
    %c0_i32 = arith.constant 0 : i32
    %c0_i32_0 = arith.constant 0 : i32
    %c0_i32_1 = arith.constant 0 : i32
    %c0_i32_2 = arith.constant 0 : i32
    return %arg0, %c0_i32, %c0_i32_0, %c0_i32_1 : i32, i32, i32, i32
  }
  func.func @transform_1(%arg0: i32, %arg1: i32) -> (i32, i32) {
    %c0_i32 = arith.constant 0 : i32
    %c0_i32_0 = arith.constant 0 : i32
    %c0_i32_1 = arith.constant 0 : i32
    return %c0_i32, %c0_i32_0 : i32, i32
  }
  func.func @transform_2(%arg0: i32, %arg1: i32) -> (i32, i32, i32) {
    %c0_i32 = arith.constant 0 : i32
    %c0_i32_0 = arith.constant 0 : i32
    %c0_i32_1 = arith.constant 0 : i32
    %c0_i32_2 = arith.constant 0 : i32
    return %c0_i32, %c0_i32_0, %c0_i32_1 : i32, i32, i32
  }
  func.func @transform_3(%arg0: i32, %arg1: i32) -> (i32, i32) {
    %c0_i32 = arith.constant 0 : i32
    %c0_i32_0 = arith.constant 0 : i32
    %c0_i32_1 = arith.constant 0 : i32
    return %c0_i32, %c0_i32_0 : i32, i32
  }
  func.func @transform_4(%arg0: i32, %arg1: i32) -> (i32, i32) {
    %c0_i32 = arith.constant 0 : i32
    %c0_i32_0 = arith.constant 0 : i32
    %c0_i32_1 = arith.constant 0 : i32
    return %c0_i32, %c0_i32_0 : i32, i32
  }
  func.func @transform_5(%arg0: i32, %arg1: i32) -> (i32, i32) {
    %c0_i32 = arith.constant 0 : i32
    %c0_i32_0 = arith.constant 0 : i32
    %c0_i32_1 = arith.constant 0 : i32
    return %c0_i32, %c0_i32_0 : i32, i32
  }
  func.func @transform_6(%arg0: i32, %arg1: i32) -> (i32, i32) {
    %c0_i32 = arith.constant 0 : i32
    %c0_i32_0 = arith.constant 0 : i32
    %c0_i32_1 = arith.constant 0 : i32
    return %c0_i32, %c0_i32_0 : i32, i32
  }
  func.func @transform_7(%arg0: i32, %arg1: i32) -> (i32, i32, i32, i32) {
    %c0_i32 = arith.constant 0 : i32
    %c0_i32_0 = arith.constant 0 : i32
    %c0_i32_1 = arith.constant 0 : i32
    return %arg0, %arg1, %c0_i32, %c0_i32_0 : i32, i32, i32, i32
  }
}

</mosaic_0001>

<bundles_post_ra>
// kernel: tpu_custom_call.1
= control target key start
LH: loop header
LB: loop body
LE: loop exit
PB: predicated region body
PF: predicated region fallthrough
CT: control target
= control target key end

     0   :  { %12 = vsyncpa [#allocation3], 0  ;;  %s4863_s0 = inlined_call_operand.hbm [shape: f32[2,18,16,128], index: 0, kind: input, shape index: {}]   ;;  %s4864_s1 = inlined_call_operand.vmem [shape: bf16[128,32], index: 1, kind: input, shape index: {}]   ;;  %s4865_s2 = inlined_call_operand.vmem [shape: bf16[3,96,32], index: 2, kind: input, shape index: {}]   ;;  %s4866_s3 = inlined_call_operand.vmem [shape: bf16[32,128], index: 3, kind: input, shape index: {}]   ;;  %s4867_s4 = inlined_call_operand.vmem [shape: f32[1,32], index: 4, kind: input, shape index: {}]   ;;  %s4868_s5 = inlined_call_operand.vmem [shape: f32[1,32], index: 5, kind: input, shape index: {}]   ;;  %s4869_s6 = inlined_call_operand.vmem [shape: f32[1,128], index: 6, kind: input, shape index: {}]   ;;  %s4870_s7 = inlined_call_operand.hbm [shape: f32[2,16,16,128], index: 7, kind: output, shape index: {}]  }
   0x1   :  { %14 = vsyncpa [#allocation3 + $0x1], 0 }
   0x2   :  { %15 = vsyncpa [#allocation4], 0 }
   0x3   :  { %17 = vsyncpa [#allocation4 + $0x1], 0  ;;  %s3697_s24 = smov 0   ;;  %s3699_s25 = smov 0  }
   0x4   :  { %s3701_s26 = smov 0   ;;  %s3703_s27 = smov 0  }
   0x5   :  { %s3705_s28 = smov 0   ;;  %s3707_s29 = smov 0  }
   0x6 LB: > { %s2684_s30 = sadd.s32 4294967295, %s3646_s29   ;;  %s2685_s8 = sadd.s32 4294967294, %s3646_s29   ;;  %s3646_s29 = sphi %s3707_s29, %s23_s29   ;;  %s3642_s28 = sphi %s3705_s28, %s4921_s28   ;;  %s3638_s27 = sphi %s3703_s27, %s4920_s27   ;;  %s3634_s26 = sphi %s3701_s26, %s4919_s26   ;;  %s3630_s25 = sphi %s3699_s25, %s4918_s25   ;;  %s3626_s24 = sphi %s3697_s24, %s4917_s24  }
   0x7   : > { %s35_s9 = sadd.s32 1, %s3642_s28  ;;  %s42_s10 = sadd.s32 1, %s3634_s26 }
   0x8   : > { %p37_p0 = scmp.ge.s32.totalorder %s35_s9, 2  ;;  %p49_p1 = scmp.ne.s32.totalorder %s3634_s26, %s3630_s25 }
   0x9   : > { %p50_p2 = scmp.eq.s32.totalorder %s3646_s29, 0  ;;  %p55_p3 = scmp.ne.s32.totalorder %s3630_s25, %s3626_s24 }
   0xa   : > { %s4923_s9 = smov (%p37_p0, %s35_s9), 0  ;;  %p56_p5 = scmp.eq.s32.totalorder %s2684_s30, 0 }
   0xb   : > { %p3738_p4 = por %p50_p2, %p49_p1  ;;  %s39_s12 = ssub.s32 %s3642_s28, %s4923_s9 }
   0xc   : > { %p207_p6 = scmp.eq.s32.totalorder %s2684_s30, 1  ;;  %p40_p7 = scmp.eq.s32.totalorder %s39_s12, 0 }
   0xd   : > { %p3744_p8 = por %p56_p5, %p55_p3  ;;  %p213_p10 = scmp.eq.s32.totalorder %s2685_s8, 1 }
   0xe   : > { %p3748_p9 = por %p207_p6, %p49_p1  ;;  %p3269_p13 = scmp.lt.s32.totalorder %s3646_s29, 2 }
   0xf   : > { %s3753_s15 = scalar_select %p40_p7, %s3634_s26, %s42_s10  }
  0x10   : > { %s4874_s14 = scalar_select %p3748_p9, 1, 0 }
  0x11   : > { %p3755_p11 = por %p213_p10, %p55_p3  ;;  %s251_s17 = sand.u32 1, %s3634_s26  }
  0x12   : > { %s3254_s18 = smul.u32 288, %s251_s17  ;;  %p3765_p0 = pnand %p3269_p13, %p3738_p4 }
  0x13   : > { %s4875_s16 = scalar_select %p3755_p11, 1, 0 }
  0x14   : > { %s3255_s19 = smul.u32 4608, %s3642_s28  ;;  %s255_s30 = scalar_lea.vmem [#allocation2], %s3254_s18 }
  0x15   : > { %s262_s8 = sshll.u32 %s255_s30, 4  ;;  %s3777_s10 = scalar_lea.sflag [#allocation3], %s251_s17  ;;  %s3774_s8 = int_to_ptr.vmem [resolvable:$true] %s262_s8 }
  0x16   : > { %s3772_s23 = scalar_lea.hbm %s4863_s0, %s3255_s19  ;;  %p3536_p3 = pneg %p3765_p0 }
  0x17   : > { %s3534_s11 = scalar_lea.hbm %s3772_s23, 4608  ;;  %s3539_s21 = scalar_lea.hbm %s4863_s0, 9216 }
  0x18   : > { %p3535_p2 = scmp.ne.s32.totalorder %s3772_s23, %s3534_s11  ;;  %p3540_p6 = scmp.lt.u32.totalorder %s3772_s23, %s4863_s0 }
  0x19   : > { %p3541_p7 = scmp.lt.u32.totalorder %s3539_s21, %s3534_s11  ;;  %p3543_p13 = scmp.lt.u32.totalorder %s3534_s11, %s3772_s23 }
  0x1a   : > { %p3537_p4 = pnand %p3536_p3, %p3535_p2 }
  0x1b   : > { %p3542_p10 = por %p3541_p7, %p3540_p6 }
  0x1c   : > { %p3538_p5 = pneg %p3537_p4 }
  0x1d   : > { %p3544_p12 = por %p3543_p13, %p3542_p10 }
  0x1f   : > { %p3545_p1 = pnand %p3544_p12, %p3538_p5 }
  0x21   : > { %3548 = shalt.err (!%p3545_p1)
}
  0x22   : > { %s3549_s17 = scalar_lea.vmem %s3774_s8, 4608  ;;  %s3648_s30 = smov [#allocation2]  }
  0x23   : > { %p3550_p2 = scmp.ne.s32.totalorder %s3774_s8, %s3549_s17  ;;  %s3554_s12 = sshll.u32 %s3648_s30, 4  ;;  %s3555_s12 = int_to_ptr.vmem [resolvable:$false] %s3554_s12 }
  0x24   : > { %s3556_s19 = scalar_lea.vmem %s3555_s12, 9216  ;;  %p3557_p9 = scmp.lt.s32.totalorder %s3774_s8, %s3555_s12 }
  0x25   : > { %p3552_p4 = pnand %p3550_p2, %p3536_p3  ;;  %p3558_p6 = scmp.lt.s32.totalorder %s3556_s19, %s3549_s17 }
  0x27   : > { %p3553_p11 = pneg %p3552_p4  ;;  %p3559_p7 = por %p3558_p6, %p3557_p9 }
  0x29   : > { %p3560_p10 = pnand %p3559_p7, %p3553_p11 }
  0x2b   : > { %3563 = shalt.err (!%p3560_p10)
}
  0x2c   : > { %s3649_s11 = smov 128   ;;  %s3650_s21 = smov 8  }
  0x2d   : > { %3264 = dma.hbm_to_vmem [thread:$0]  (!%p3765_p0), %s3772_s23, 4608, %s3774_s8, %s3777_s10, %s3649_s11, %s3649_s11, %s3650_s21  }
  0x2e   : > { %p270_p12 = scmp.lt.s32.totalorder %s3646_s29, 3  ;;  %p4877_p1 = scmp.ge.s32.totalorder %s3646_s29, 1 }
  0x30   : > { %p271_p3 = pnand %p4877_p1, %p270_p12 }
  0x32   : > { %274 = sbr.rel (%p271_p3) target bundleno = 1093 (0x445), region = 48 }
  0x39   : > { %s3809_s22 = sand.u32 1, %s3630_s25  }
  0x3a   : > { %s3256_s18 = smul.u32 288, %s3809_s22  ;;  %s277_s17 = scalar_lea.sflag [#allocation3], %s3809_s22 }
  0x3c   : > { %s3813_s30 = scalar_lea.vmem [#allocation2], %s3256_s18 }
  0x3d   : > { %3617 = dma.done.wait (%p3744_p8), %s277_s17, 4608  }
  0x3e   : > { %3619 = vsyncadd (%p3744_p8), %s277_s17, 4294962688  ;;  %v3506_v0 = vld [vmem:[%s4864_s1] sm:$0xff]   ;;  %v3507_v1 = vld [vmem:[%s4864_s1 + $0x8] sm:$0xff]   ;;  %s3651_s13 = smov 32   ;;  %s3652_s18 = smov 64   ;;  %vm1319_vm3 = vcmask 261120  }
  0x3f   : > { %2958 = vmatprep.subr.bf16.mxu0 %v3506_v0  ;;  %v3508_v2 = vld [vmem:[%s4864_s1 + $0x10] sm:$0xff]   ;;  %v3509_v3 = vld [vmem:[%s4864_s1 + $0x18] sm:$0xff]   ;;  %v316_v4 = vld [vmem:[%s3813_s30] sm:$0xff]  ;;  %vm1356_vm5 = vcmask 523264   ;;  %vm1472_vm6 = vcmask 785408   ;;  %s2847_s20 = sshll.u32 %s3638_s27, 12 }
  0x40   : > { %2959 = vmatpush3.bf16.msra.mxu0 %v3506_v0  ;;  %v317_v5 = vld [vmem:[%s3813_s30 + $0x8] sm:$0xff]  ;;  %v3510_v7 = vld [vmem:[%s4864_s1 + $0x20] sm:$0xff]   ;;  %v3512_v9 = vld [vmem:[%s4864_s1 + $0x30] sm:$0xff]   ;;  %v798_v0 = vlaneseq  ;;  %s2578_s27 = scalar_lea.sflag [#allocation4], %s3809_s22  ;;  %p4914_p9 = scmp.ne.s32.totalorder %s4874_s14, 0 }
  0x41   : > { %2960 = vmatprep.subr.bf16.mxu0 %v3507_v1  ;;  %v352_v6 = vpack.c.bf16 %v317_v5, %v316_v4  ;;  %v3511_v8 = vld [vmem:[%s4864_s1 + $0x28] sm:$0xff]   ;;  %v3513_v10 = vld [vmem:[%s4864_s1 + $0x38] sm:$0xff]   ;;  %v318_v11 = vld [vmem:[%s3813_s30 + $0x10] sm:$0xff]  ;;  %s3654_s19 = smov [#allocation5]  }
  0x42   : > { %v319_v12 = vld [vmem:[%s3813_s30 + $0x18] sm:$0xff]  ;;  %v320_v13 = vld [vmem:[%s3813_s30 + $0x20] sm:$0xff]  ;;  %v321_v14 = vld [vmem:[%s3813_s30 + $0x28] sm:$0xff] }
  0x43   : > { %2974 = vmatprep.mubr.bf16.mxu0 %v352_v6  ;;  %v353_v15 = vpack.c.bf16 %v319_v12, %v318_v11  ;;  %v354_v16 = vpack.c.bf16 %v321_v14, %v320_v13  ;;  %v322_v17 = vld [vmem:[%s3813_s30 + $0x30] sm:$0xff]  ;;  %v323_v18 = vld [vmem:[%s3813_s30 + $0x38] sm:$0xff]  ;;  %v324_v19 = vld [vmem:[%s3813_s30 + $0x40] sm:$0xff] }
  0x44   : > { %2961 = vmatpush3.bf16.msra.mxu0 %v3507_v1  ;;  %v325_v20 = vld [vmem:[%s3813_s30 + $0x48] sm:$0xff]  ;;  %v355_v21 = vpack.c.bf16 %v323_v18, %v322_v17  ;;  %v326_v23 = vld [vmem:[%s3813_s30 + $0x50] sm:$0xff]  ;;  %v327_v24 = vld [vmem:[%s3813_s30 + $0x58] sm:$0xff] }
  0x45   : > { %2962 = vmatprep.subr.bf16.mxu0 %v3508_v2  ;;  %v356_v22 = vpack.c.bf16 %v325_v20, %v324_v19  ;;  %v328_v25 = vld [vmem:[%s3813_s30 + $0x60] sm:$0xff]  ;;  %v329_v26 = vld [vmem:[%s3813_s30 + $0x68] sm:$0xff]  ;;  %v357_v27 = vpack.c.bf16 %v327_v24, %v326_v23  ;;  %v330_v29 = vld [vmem:[%s3813_s30 + $0x70] sm:$0xff] }
  0x46   : > { %v358_v28 = vpack.c.bf16 %v329_v26, %v328_v25  ;;  %v331_v30 = vld [vmem:[%s3813_s30 + $0x78] sm:$0xff]  ;;  %v332_v31 = vld [vmem:[%s3813_s30 + $0x80] sm:$0xff]  ;;  %v333_v32 = vld [vmem:[%s3813_s30 + $0x88] sm:$0xff] }
  0x47   : > { %v359_v33 = vpack.c.bf16 %v331_v30, %v330_v29  ;;  %v360_v34 = vpack.c.bf16 %v333_v32, %v332_v31  ;;  %v334_v35 = vld [vmem:[%s3813_s30 + $0x90] sm:$0xff]  ;;  %v335_v36 = vld [vmem:[%s3813_s30 + $0x98] sm:$0xff]  ;;  %v336_v37 = vld [vmem:[%s3813_s30 + $0xa0] sm:$0xff] }
  0x48   : > { %2963 = vmatpush3.bf16.msra.mxu0 %v3508_v2  ;;  %v337_v38 = vld [vmem:[%s3813_s30 + $0xa8] sm:$0xff]  ;;  %v361_v39 = vpack.c.bf16 %v335_v36, %v334_v35  ;;  %v338_v41 = vld [vmem:[%s3813_s30 + $0xb0] sm:$0xff]  ;;  %v339_v42 = vld [vmem:[%s3813_s30 + $0xb8] sm:$0xff]  ;;  %v3890_v2 = vshrl.u32 %v798_v0, 7 }
  0x49   : > { %2964 = vmatprep.subr.bf16.mxu0 %v3509_v3  ;;  %v362_v40 = vpack.c.bf16 %v337_v38, %v336_v37  ;;  %v340_v43 = vld [vmem:[%s3813_s30 + $0xc0] sm:$0xff]  ;;  %v341_v44 = vld [vmem:[%s3813_s30 + $0xc8] sm:$0xff]  ;;  %v363_v45 = vpack.c.bf16 %v339_v42, %v338_v41  ;;  %v342_v47 = vld [vmem:[%s3813_s30 + $0xd0] sm:$0xff] }
  0x4a   : > { %v364_v46 = vpack.c.bf16 %v341_v44, %v340_v43  ;;  %v343_v48 = vld [vmem:[%s3813_s30 + $0xd8] sm:$0xff]  ;;  %v344_v49 = vld [vmem:[%s3813_s30 + $0xe0] sm:$0xff]  ;;  %v345_v50 = vld [vmem:[%s3813_s30 + $0xe8] sm:$0xff]  ;;  %vm839_vm0 = vcmp.lt.s32.totalorder %v3890_v2, 1  ;;  %vm954_vm2 = vcmp.lt.s32.totalorder %v3890_v2, 7  ;;  %vm801_vm4 = vcmp.ge.s32.totalorder %v3890_v2, 1 }
  0x4b   : > { %v365_v51 = vpack.c.bf16 %v343_v48, %v342_v47  ;;  %v366_v52 = vpack.c.bf16 %v345_v50, %v344_v49  ;;  %v346_v53 = vld [vmem:[%s3813_s30 + $0xf0] sm:$0xff]  ;;  %v347_v54 = vld [vmem:[%s3813_s30 + $0xf8] sm:$0xff]  ;;  %v348_v55 = vld [vmem:[%s3813_s30 + $0x100] sm:$0xff] }
  0x4c   : > { %2965 = vmatpush3.bf16.msra.mxu0 %v3509_v3  ;;  %v349_v56 = vld [vmem:[%s3813_s30 + $0x108] sm:$0xff]  ;;  %v367_v57 = vpack.c.bf16 %v347_v54, %v346_v53  ;;  %v350_v59 = vld [vmem:[%s3813_s30 + $0x110] sm:$0xff]  ;;  %v351_v60 = vld [vmem:[%s3813_s30 + $0x118] sm:$0xff] }
  0x4d   : > { %2966 = vmatprep.subr.bf16.mxu0 %v3510_v7  ;;  %v368_v58 = vpack.c.bf16 %v349_v56, %v348_v55  ;;  %v369_v61 = vpack.c.bf16 %v351_v60, %v350_v59  ;;  %v3514_v62 = vld [vmem:[%s4865_s2 + $0x30] sm:$0xff]   ;;  %v3515_v63 = vld [vmem:[%s4865_s2 + $0x38] sm:$0xff]   ;;  %v3888_v1 = vld [vmem:[%s4867_s4] ss:$0 sm:$0xff] }
  0x4e   : > { %3178 = vmatprep.subr.bf16.mxu1 %v3514_v62 }
  0x4f   : > { %3184 = vmatpush3.bf16.msra.mxu1 %v3514_v62 }
  0x50   : > { %2967 = vmatpush3.bf16.msra.mxu0 %v3510_v7  ;;  %3179 = vmatprep.subr.bf16.mxu1 %v3515_v63  ;;  %v3894_v7 = vadd.s32 8, %v3890_v2 }
  0x51   : > { %2968 = vmatprep.subr.bf16.mxu0 %v3511_v8 }
  0x52   : > { %vm917_vm1 = vcmp.le.s32.totalorder %v3894_v7, 14 }
  0x53   : > { %3185 = vmatpush3.bf16.msra.mxu1 %v3515_v63 }
  0x54   : > { %2969 = vmatpush3.bf16.msra.mxu0 %v3511_v8 }
  0x55   : > { %2970 = vmatprep.subr.bf16.mxu0 %v3512_v9 }
  0x58   : > { %2971 = vmatpush3.bf16.msra.mxu0 %v3512_v9 }
  0x59   : > { %2972 = vmatprep.subr.bf16.mxu0 %v3513_v10 }
  0x5c   : > { %2973 = vmatpush3.bf16.msra.mxu0 %v3513_v10 }
  0x5d   : > { %3010 = vmatprep.subr.bf16.mxu0 %v3514_v62 }
  0x5f   : > { %2975 = vmatmul.mubr.bf16.vlgmr.msra.gmra.mrb[0].mxu0 %v353_v15 }
  0x60   : > { %2978 = vmatprep.mubr.bf16.mxu0 %v354_v16  ;;  %3011 = vmatpush3.bf16.msra.mxu0 %v3514_v62 }
  0x61   : > { %3012 = vmatprep.subr.bf16.mxu0 %v3515_v63 }
  0x64   : > { %3013 = vmatpush3.bf16.msra.mxu0 %v3515_v63 }
  0x67   : > { %2979 = vmatmul.mubr.bf16.gmra.mrb[4].mxu0 %v355_v21 }
  0x68   : > { %2982 = vmatprep.mubr.bf16.mxu0 %v356_v22 }
  0x6f   : > { %2983 = vmatmul.mubr.bf16.gmra.mrb[8].mxu0 %v357_v27 }
  0x70   : > { %2986 = vmatprep.mubr.bf16.mxu0 %v358_v28 }
  0x77   : > { %2987 = vmatmul.mubr.bf16.gmra.mrb[12].mxu0 %v359_v33 }
  0x78   : > { %2990 = vmatprep.mubr.bf16.mxu0 %v360_v34 }
  0x7f   : > { %2991 = vmatmul.mubr.bf16.gmra.mrb[16].mxu0 %v361_v39 }
  0x80   : > { %2994 = vmatprep.mubr.bf16.mxu0 %v362_v40 }
  0x87   : > { %2995 = vmatmul.mubr.bf16.gmra.mrb[20].mxu0 %v363_v45 }
  0x88   : > { %2998 = vmatprep.mubr.bf16.mxu0 %v364_v46 }
  0x8f   : > { %2999 = vmatmul.mubr.bf16.gmra.mrb[24].mxu0 %v365_v51 }
  0x90   : > { %3002 = vmatprep.mubr.bf16.mxu0 %v366_v52 }
  0x97   : > { %3003 = vmatmul.mubr.bf16.gmra.mrb[28].mxu0 %v367_v57 }
  0x98   : > { %3006 = vmatprep.mubr.bf16.mxu0 %v368_v58 }
  0x9f   : > { %3007 = vmatmul.mubr.bf16.gmra.mrb[32].mxu0 %v369_v61 }
 0x132   : > { %v2976_v3 = vpop.f32.mrb[0].mxu0 }
 0x133   : > { %v484_v4 = vadd.f32 %v2976_v3, %v3888_v1  ;;  %v475_v5 = vpop.f32.mrb[1].mxu0 }
 0x134   : > { %v2977_v6 = vpop.f32.mrb[2].mxu0 }
 0x135   : > { %v3896_v8 = vmax.f32 %v484_v4, 0.0  ;;  %v487_v9 = vadd.f32 %v2977_v6, %v3888_v1  ;;  %v478_v10 = vpop.f32.mrb[3].mxu0  ;;  %v3516_v6 = vld [vmem:[%s4865_s2 + $0x40] sm:$0xff]  }
 0x136   : > { %3180 = vmatprep.subr.bf16.mxu1 %v3516_v6  ;;  %3014 = vmatprep.subr.bf16.mxu0 %v3516_v6 }
 0x137   : > { %v3899_v11 = vmax.f32 %v487_v9, 0.0  ;;  %v804_v12 = vrot.slane %v3896_v8, 7  ;;  %v919_v13 = vrot.slane %v3896_v8, 1  ;;  %3186 = vmatpush3.bf16.msra.mxu1 %v3516_v6  ;;  %3015 = vmatpush3.bf16.msra.mxu0 %v3516_v6 }
 0x139   : > { %v822_v14 = vrot.slane %v3899_v11, 7  ;;  %v937_v15 = vrot.slane %v3899_v11, 1 }
 0x13a   : > { %v2980_v17 = vpop.f32.mrb[4].mxu0 }
 0x13b   : > { %v500_v18 = vadd.f32 %v2980_v17, %v3888_v1  ;;  %v491_v19 = vpop.f32.mrb[5].mxu0  ;;  %v3913_v20 = vsel %vm954_vm2, %v919_v13, %v937_v15  ;;  %v974_v21 = vsel %vm954_vm2, %v937_v15, %v919_v13  ;;  %v3919_v22 = vsel %vm839_vm0, %v804_v12, %v822_v14 }
 0x13c   : > { %4878 = vst [vmem:[#allocation8_spill] sm:$0xff] %v3919_v22  ;;  %v492_v23 = vadd.f32 %v3888_v1, %v491_v19  ;;  %v2981_v24 = vpop.f32.mrb[6].mxu0  ;;  %v3924_v25 = vsel %vm917_vm1, %v974_v21, 0.0  ;;  %v3928_v26 = vsel %vm839_vm0, %v822_v14, %v804_v12  ;;  %v3517_v21 = vld [vmem:[%s4865_s2 + $0x48] sm:$0xff]   ;;  %v4122_v19 = vld [vmem:[%s4865_s2] sm:$0xff]  }
 0x13d   : > { %4879 = vst [vmem:[#allocation9_spill] sm:$0xff] %v3928_v26  ;;  %v3930_v27 = vmax.f32 %v500_v18, 0.0  ;;  %v503_v28 = vadd.f32 %v2981_v24, %v3888_v1  ;;  %v494_v29 = vpop.f32.mrb[7].mxu0  ;;  %3181 = vmatprep.subr.bf16.mxu1 %v3517_v21  ;;  %3016 = vmatprep.subr.bf16.mxu0 %v3517_v21  ;;  %v4891_v7 = vpack.i.bf16 %v3924_v25, %v3913_v20 }
 0x13e   : > { %v3935_v31 = vmax.f32 %v492_v23, 0.0  ;;  %v495_v32 = vadd.f32 %v3888_v1, %v494_v29  ;;  %3187 = vmatpush3.bf16.msra.mxu1 %v3517_v21  ;;  %3017 = vmatpush3.bf16.msra.mxu0 %v3517_v21 }
 0x13f   : > { %v3938_v33 = vmax.f32 %v503_v28, 0.0  ;;  %v806_v34 = vrot.slane %v3930_v27, 7  ;;  %v921_v35 = vrot.slane %v3930_v27, 1 }
 0x140   : > { %v3942_v36 = vmax.f32 %v495_v32, 0.0  ;;  %v805_v37 = vrot.slane %v3935_v31, 7  ;;  %v920_v41 = vrot.slane %v3935_v31, 1 }
 0x141   : > { %v824_v38 = vrot.slane %v3938_v33, 7  ;;  %v939_v39 = vrot.slane %v3938_v33, 1 }
 0x142   : > { %v823_v42 = vrot.slane %v3942_v36, 7  ;;  %v938_v43 = vrot.slane %v3942_v36, 1  ;;  %v2984_v44 = vpop.f32.mrb[8].mxu0 }
 0x143   : > { %v516_v46 = vadd.f32 %v2984_v44, %v3888_v1  ;;  %v507_v47 = vpop.f32.mrb[9].mxu0  ;;  %v3957_v48 = vsel %vm954_vm2, %v921_v35, %v939_v39  ;;  %v976_v49 = vsel %vm954_vm2, %v939_v39, %v921_v35  ;;  %v3963_v50 = vsel %vm839_vm0, %v806_v34, %v824_v38 }
 0x144   : > { %4880 = vst [vmem:[#allocation10_spill] sm:$0xff] %v3963_v50  ;;  %v508_v51 = vadd.f32 %v3888_v1, %v507_v47  ;;  %v2985_v52 = vpop.f32.mrb[10].mxu0  ;;  %v3968_v53 = vsel %vm954_vm2, %v920_v41, %v938_v43  ;;  %v975_v54 = vsel %vm954_vm2, %v938_v43, %v920_v41  ;;  %v3974_v55 = vsel %vm917_vm1, %v976_v49, 0.0 }
 0x145   : > { %v3976_v56 = vmax.f32 %v516_v46, 0.0  ;;  %v519_v57 = vadd.f32 %v2985_v52, %v3888_v1  ;;  %v510_v58 = vpop.f32.mrb[11].mxu0  ;;  %v3981_v59 = vsel %vm917_vm1, %v975_v54, 0.0  ;;  %v3992_v0 = vsel %vm839_vm0, %v805_v37, %v823_v42 }
 0x146   : > { %v3985_v61 = vmax.f32 %v508_v51, 0.0  ;;  %v511_v62 = vadd.f32 %v3888_v1, %v510_v58  ;;  %4881 = vst [vmem:[#allocation11_spill] sm:$0xff] %v3992_v0  ;;  %v3998_v4 = vsel %vm839_vm0, %v823_v42, %v805_v37  ;;  %v4011_v13 = vsel %vm839_vm0, %v824_v38, %v806_v34 }
 0x147   : > { %v3994_v3 = vmax.f32 %v519_v57, 0.0  ;;  %4882 = vst [vmem:[#allocation12_spill] sm:$0xff] %v3998_v4  ;;  %v923_v9 = vrot.slane %v3976_v56, 1  ;;  %4883 = vst [vmem:[#allocation13_spill] sm:$0xff] %v4011_v13  ;;  %v808_v57 = vrot.slane %v3976_v56, 7 }
 0x148   : > { %v4000_v5 = vmax.f32 %v511_v62, 0.0  ;;  %v807_v14 = vrot.slane %v3985_v61, 7  ;;  %v922_v15 = vrot.slane %v3985_v61, 1 }
 0x149   : > { %v941_v10 = vrot.slane %v3994_v3, 1  ;;  %v826_v21 = vrot.slane %v3994_v3, 7  ;;  %v4897_v25 = vpack.i.bf16 %v3994_v3, %v3976_v56 }
 0x14a   : > { %v940_v17 = vrot.slane %v4000_v5, 1  ;;  %v2988_v18 = vpop.f32.mrb[12].mxu0  ;;  %v825_v23 = vrot.slane %v4000_v5, 7  ;;  %v4896_v20 = vpack.i.bf16 %v4000_v5, %v3985_v61 }
 0x14b   : > { %v532_v24 = vadd.f32 %v2988_v18, %v3888_v1  ;;  %v523_v28 = vpop.f32.mrb[13].mxu0  ;;  %v4025_v29 = vsel %vm954_vm2, %v923_v9, %v941_v10  ;;  %v978_v32 = vsel %vm954_vm2, %v941_v10, %v923_v9  ;;  %v3518_v18 = vld [vmem:[%s4865_s2 + $0x50] sm:$0xff]  }
 0x14c   : > { %v524_v34 = vadd.f32 %v3888_v1, %v523_v28  ;;  %v2989_v35 = vpop.f32.mrb[14].mxu0  ;;  %v4032_v37 = vsel %vm954_vm2, %v922_v15, %v940_v17  ;;  %v977_v38 = vsel %vm954_vm2, %v940_v17, %v922_v15  ;;  %v4038_v39 = vsel %vm917_vm1, %v978_v32, 0.0  ;;  %3182 = vmatprep.subr.bf16.mxu1 %v3518_v18  ;;  %3018 = vmatprep.subr.bf16.mxu0 %v3518_v18 }
 0x14d   : > { %v632_v41 = vmax.f32 %v532_v24, 0.0  ;;  %v535_v42 = vadd.f32 %v2989_v35, %v3888_v1  ;;  %v526_v43 = vpop.f32.mrb[15].mxu0  ;;  %v4043_v44 = vsel %vm917_vm1, %v977_v38, 0.0  ;;  %v4054_v54 = vsel %vm839_vm0, %v807_v14, %v825_v23  ;;  %3188 = vmatpush3.bf16.msra.mxu1 %v3518_v18  ;;  %3019 = vmatpush3.bf16.msra.mxu0 %v3518_v18 }
 0x14e   : > { %v4047_v47 = vmax.f32 %v524_v34, 0.0  ;;  %v527_v49 = vadd.f32 %v3888_v1, %v526_v43  ;;  %4884 = vst [vmem:[#allocation14_spill] sm:$0xff] %v4054_v54  ;;  %v4061_v6 = vsel %vm839_vm0, %v825_v23, %v807_v14 }
 0x14f   : > { %v633_v52 = vmax.f32 %v535_v42, 0.0  ;;  %v810_v58 = vrot.slane %v632_v41, 7  ;;  %4885 = vst [vmem:[#allocation15_spill] sm:$0xff] %v4061_v6  ;;  %v925_v9 = vrot.slane %v632_v41, 1 }
 0x150   : > { %v4057_v62 = vmax.f32 %v527_v49, 0.0  ;;  %v924_v24 = vrot.slane %v4047_v47, 1 }
 0x151   : > { %v828_v10 = vrot.slane %v633_v52, 7  ;;  %v943_v15 = vrot.slane %v633_v52, 1  ;;  %v3326_v17 = vpack.i.bf16 %v633_v52, %v632_v41 }
 0x152   : > { %v942_v28 = vrot.slane %v4057_v62, 1  ;;  %v2992_v32 = vpop.f32.mrb[16].mxu0 }
 0x153   : > { %v548_v14 = vadd.f32 %v2992_v32, %v3888_v1  ;;  %3327 = vrot.lane.b32.xlu0 %v3326_v17, %s3651_s13  ;;  %v539_v23 = vpop.f32.mrb[17].mxu0  ;;  %v962_v35 = vsel %vm954_vm2, %v925_v9, %v943_v15  ;;  %v980_v38 = vsel %vm954_vm2, %v943_v15, %v925_v9  ;;  %v4079_v41 = vsel %vm839_vm0, %v810_v58, %v828_v10 }
 0x154   : > { %v540_v42 = vadd.f32 %v3888_v1, %v539_v23  ;;  %v2993_v43 = vpop.f32.mrb[18].mxu0  ;;  %v1010_v49 = vsel %vm917_vm1, %v980_v38, 0.0  ;;  %v4086_v52 = vsel %vm954_vm2, %v924_v24, %v942_v28  ;;  %v979_v17 = vsel %vm954_vm2, %v942_v28, %v924_v24 }
 0x155   : > { %v4090_v9 = vmax.f32 %v548_v14, 0.0  ;;  %v551_v15 = vadd.f32 %v2993_v43, %v3888_v1  ;;  %v542_v32 = vpop.f32.mrb[19].mxu0  ;;  %v3331_v34 = vpack.i.bf16 %v1010_v49, %v962_v35  ;;  %v4095_v23 = vsel %vm917_vm1, %v979_v17, 0.0  ;;  %v3519_v14 = vld [vmem:[%s4865_s2 + $0x58] sm:$0xff]  }
 0x156   : > { %v634_v38 = vmax.f32 %v540_v42, 0.0  ;;  %v543_v46 = vadd.f32 %v3888_v1, %v542_v32  ;;  %v4102_v28 = vsel %vm839_vm0, %v828_v10, %v810_v58  ;;  %3183 = vmatprep.subr.bf16.mxu1 %v3519_v14  ;;  %3020 = vmatprep.subr.bf16.mxu0 %v3519_v14  ;;  %v4112_v58 = vsel %vm839_vm0, %v808_v57, %v826_v21 }
 0x157   : > { %v812_v35 = vrot.slane %v4090_v9, 7  ;;  %v637_v43 = vmax.f32 %v551_v15, 0.0  ;;  %3332 = vrot.lane.b32.xlu1 %v3331_v34, %s3652_s18  ;;  %v927_v18 = vrot.slane %v4090_v9, 1  ;;  %4886 = vst [vmem:[#allocation16_spill] sm:$0xff] %v4112_v58  ;;  %3189 = vmatpush3.bf16.msra.mxu1 %v3519_v14  ;;  %v4117_v15 = vsel %vm839_vm0, %v826_v21, %v808_v57 }
 0x158   : > { %v811_v42 = vrot.slane %v634_v38, 7  ;;  %v635_v49 = vmax.f32 %v543_v46, 0.0  ;;  %3021 = vmatpush3.bf16.msra.mxu0 %v3519_v14  ;;  %4887 = vst [vmem:[#allocation17_spill] sm:$0xff] %v4117_v15  ;;  %v926_v34 = vrot.slane %v634_v38, 1  ;;  %3054 = vmatprep.subr.bf16.mxu1 %v4122_v19 }
 0x159   : > { %v830_v10 = vrot.slane %v637_v43, 7  ;;  %v945_v17 = vrot.slane %v637_v43, 1  ;;  %v3341_v32 = vpack.i.bf16 %v637_v43, %v4090_v9 }
 0x15a   : > { %v829_v24 = vrot.slane %v635_v49, 7  ;;  %v944_v51 = vrot.slane %v635_v49, 1  ;;  %v2996_v46 = vpop.f32.mrb[20].mxu0  ;;  %v3336_v12 = vpack.i.bf16 %v635_v49, %v634_v38 }
 0x15b   : > { %v564_v60 = vadd.f32 %v2996_v46, %v3888_v1  ;;  %v555_v63 = vpop.f32.mrb[21].mxu0  ;;  %v964_v9 = vsel %vm954_vm2, %v927_v18, %v945_v17  ;;  %v982_v57 = vsel %vm954_vm2, %v945_v17, %v927_v18  ;;  %v4131_v21 = vsel %vm839_vm0, %v812_v35, %v830_v10 }
 0x15c   : > { %v556_v38 = vadd.f32 %v3888_v1, %v555_v63  ;;  %v2997_v14 = vpop.f32.mrb[22].mxu0  ;;  %3337 = vrot.lane.b32.xlu0 %v3336_v12, %s3651_s13  ;;  %v963_v43 = vsel %vm954_vm2, %v926_v34, %v944_v51  ;;  %v981_v49 = vsel %vm954_vm2, %v944_v51, %v926_v34  ;;  %v1014_v46 = vsel %vm917_vm1, %v982_v57, 0.0 }
 0x15d   : > { %v640_v18 = vmax.f32 %v564_v60, 0.0  ;;  %v567_v17 = vadd.f32 %v2997_v14, %v3888_v1  ;;  %v558_v40 = vpop.f32.mrb[23].mxu0  ;;  %v1012_v63 = vsel %vm917_vm1, %v981_v49, 0.0  ;;  %v3346_v45 = vpack.i.bf16 %v1014_v46, %v964_v9 }
 0x15e   : > { %v638_v12 = vmax.f32 %v556_v38, 0.0  ;;  %v559_v30 = vadd.f32 %v3888_v1, %v558_v40  ;;  %v3351_v16 = vpack.i.bf16 %v1012_v63, %v963_v43  ;;  %v4148_v51 = vsel %vm839_vm0, %v811_v42, %v829_v24 }
 0x15f   : > { %v641_v34 = vmax.f32 %v567_v17, 0.0  ;;  %v4152_v57 = vsel %vm839_vm0, %v829_v24, %v811_v42  ;;  %v814_v60 = vrot.slane %v640_v18, 7  ;;  %v929_v14 = vrot.slane %v640_v18, 1 }
 0x160   : > { %v813_v58 = vrot.slane %v638_v12, 7  ;;  %v639_v15 = vmax.f32 %v559_v30, 0.0  ;;  %3342 = vrot.lane.b32.xlu0 %v3341_v32, %s3651_s13  ;;  %3352 = vrot.lane.b32.xlu1 %v3351_v16, %s3652_s18  ;;  %v4158_v43 = vsel %vm839_vm0, %v830_v10, %v812_v35  ;;  %v928_v49 = vrot.slane %v638_v12, 1 }
 0x161   : > { %v832_v9 = vrot.slane %v641_v34, 7  ;;  %v947_v40 = vrot.slane %v641_v34, 1  ;;  %v3356_v38 = vpack.i.bf16 %v641_v34, %v640_v18 }
 0x162   : > { %v831_v46 = vrot.slane %v639_v15, 7  ;;  %v946_v17 = vrot.slane %v639_v15, 1  ;;  %v3000_v24 = vpop.f32.mrb[24].mxu0  ;;  %v3361_v42 = vpack.i.bf16 %v639_v15, %v638_v12 }
 0x163   : > { %v580_v63 = vadd.f32 %v3000_v24, %v3888_v1  ;;  %v571_v54 = vpop.f32.mrb[25].mxu0  ;;  %v966_v30 = vsel %vm954_vm2, %v929_v14, %v947_v40  ;;  %v984_v16 = vsel %vm954_vm2, %v947_v40, %v929_v14  ;;  %v4167_v32 = vsel %vm839_vm0, %v814_v60, %v832_v9 }
 0x164   : > { %v572_v35 = vadd.f32 %v3888_v1, %v571_v54  ;;  %v3001_v10 = vpop.f32.mrb[26].mxu0  ;;  %3347 = vrot.lane.b32.xlu0 %v3346_v45, %s3652_s18  ;;  %3362 = vrot.lane.b32.xlu1 %v3361_v42, %s3651_s13  ;;  %v965_v15 = vsel %vm954_vm2, %v928_v49, %v946_v17  ;;  %v983_v18 = vsel %vm954_vm2, %v946_v17, %v928_v49  ;;  %v1018_v12 = vsel %vm917_vm1, %v984_v16, 0.0 }
 0x165   : > { %v644_v34 = vmax.f32 %v580_v63, 0.0  ;;  %v583_v14 = vadd.f32 %v3001_v10, %v3888_v1  ;;  %v574_v40 = vpop.f32.mrb[27].mxu0  ;;  %v1016_v54 = vsel %vm917_vm1, %v983_v18, 0.0  ;;  %v3366_v24 = vpack.i.bf16 %v1018_v12, %v966_v30 }
 0x166   : > { %v642_v45 = vmax.f32 %v572_v35, 0.0  ;;  %v575_v42 = vadd.f32 %v3888_v1, %v574_v40  ;;  %v3371_v6 = vpack.i.bf16 %v1016_v54, %v965_v15  ;;  %v4184_v50 = vsel %vm839_vm0, %v813_v58, %v831_v46 }
 0x167   : > { %v645_v49 = vmax.f32 %v583_v14, 0.0  ;;  %v4188_v17 = vsel %vm839_vm0, %v831_v46, %v813_v58  ;;  %v816_v63 = vrot.slane %v644_v34, 7  ;;  %v931_v16 = vrot.slane %v644_v34, 1 }
 0x168   : > { %v815_v10 = vrot.slane %v642_v45, 7  ;;  %v643_v13 = vmax.f32 %v575_v42, 0.0  ;;  %3357 = vrot.lane.b32.xlu0 %v3356_v38, %s3651_s13  ;;  %3372 = vrot.lane.b32.xlu1 %v3371_v6, %s3652_s18  ;;  %v4194_v18 = vsel %vm839_vm0, %v832_v9, %v814_v60  ;;  %v930_v12 = vrot.slane %v642_v45, 1 }
 0x169   : > { %v834_v30 = vrot.slane %v645_v49, 7  ;;  %v949_v35 = vrot.slane %v645_v49, 1  ;;  %v3376_v15 = vpack.i.bf16 %v645_v49, %v644_v34 }
 0x16a   : > { %v833_v14 = vrot.slane %v643_v13, 7  ;;  %v948_v40 = vrot.slane %v643_v13, 1  ;;  %v3004_v58 = vpop.f32.mrb[28].mxu0  ;;  %v3381_v46 = vpack.i.bf16 %v643_v13, %v642_v45 }
 0x16b   : > { %v596_v54 = vadd.f32 %v3004_v58, %v3888_v1  ;;  %v587_v0 = vpop.f32.mrb[29].mxu0  ;;  %v968_v38 = vsel %vm954_vm2, %v931_v16, %v949_v35  ;;  %v986_v6 = vsel %vm954_vm2, %v949_v35, %v931_v16  ;;  %v4203_v34 = vsel %vm839_vm0, %v816_v63, %v834_v30 }
 0x16c   : > { %4888 = vst [vmem:[#allocation18_spill] sm:$0xff] %v4203_v34  ;;  %v588_v60 = vadd.f32 %v3888_v1, %v587_v0  ;;  %v3005_v9 = vpop.f32.mrb[30].mxu0  ;;  %3367 = vrot.lane.b32.xlu0 %v3366_v24, %s3652_s18  ;;  %3382 = vrot.lane.b32.xlu1 %v3381_v46, %s3651_s13  ;;  %v967_v13 = vsel %vm954_vm2, %v930_v12, %v948_v40  ;;  %v1022_v42 = vsel %vm917_vm1, %v986_v6, 0.0 }
 0x16d   : > { %v985_v45 = vsel %vm954_vm2, %v948_v40, %v930_v12  ;;  %v648_v49 = vmax.f32 %v596_v54, 0.0  ;;  %v599_v16 = vadd.f32 %v3005_v9, %v3888_v1  ;;  %v590_v35 = vpop.f32.mrb[31].mxu0  ;;  %v3386_v58 = vpack.i.bf16 %v1022_v42, %v968_v38 }
 0x16e   : > { %v1020_v0 = vsel %vm917_vm1, %v985_v45, 0.0  ;;  %v646_v24 = vmax.f32 %v588_v60, 0.0  ;;  %v591_v46 = vadd.f32 %v3888_v1, %v590_v35  ;;  %v4220_v22 = vsel %vm839_vm0, %v815_v10, %v833_v14 }
 0x16f   : > { %v3391_v4 = vpack.i.bf16 %v1020_v0, %v967_v13  ;;  %4889 = vst [vmem:[#allocation19_spill] sm:$0xff] %v4220_v22  ;;  %v809_v12 = vrot.slane %v4047_v47, 7  ;;  %v827_v40 = vrot.slane %v4057_v62, 7  ;;  %v649_v54 = vmax.f32 %v599_v16, 0.0 }
 0x170   : > { %v4226_v6 = vsel %vm839_vm0, %v833_v14, %v815_v10  ;;  %v818_v9 = vrot.slane %v648_v49, 7  ;;  %v933_v45 = vrot.slane %v648_v49, 1  ;;  %v817_v38 = vrot.slane %v646_v24, 7  ;;  %3377 = vrot.lane.b32.xlu0 %v3376_v15, %s3651_s13 }
 0x171   : > { %v647_v60 = vmax.f32 %v591_v46, 0.0  ;;  %3392 = vrot.lane.b32.xlu1 %v3391_v4, %s3652_s18  ;;  %v836_v13 = vrot.slane %v649_v54, 7  ;;  %v951_v42 = vrot.slane %v649_v54, 1  ;;  %v3396_v35 = vpack.i.bf16 %v649_v54, %v648_v49 }
 0x172   : > { %v4232_v0 = vsel %vm839_vm0, %v834_v30, %v816_v63  ;;  %v932_v16 = vrot.slane %v646_v24, 1  ;;  %v3008_v10 = vpop.f32.mrb[32].mxu0 }
 0x173   : > { %v835_v26 = vrot.slane %v647_v60, 7  ;;  %v950_v34 = vrot.slane %v647_v60, 1  ;;  %v3401_v14 = vpack.i.bf16 %v647_v60, %v646_v24  ;;  %v603_v22 = vpop.f32.mrb[33].mxu0  ;;  %v970_v46 = vsel %vm954_vm2, %v933_v45, %v951_v42 }
 0x174   : > { %v988_v15 = vsel %vm954_vm2, %v951_v42, %v933_v45  ;;  %v4240_v4 = vsel %vm839_vm0, %v818_v9, %v836_v13  ;;  %v4244_v63 = vsel %vm839_vm0, %v836_v13, %v818_v9  ;;  %v604_v30 = vadd.f32 %v3888_v1, %v603_v22  ;;  %v3009_v49 = vpop.f32.mrb[34].mxu0  ;;  %3387 = vrot.lane.b32.xlu0 %v3386_v58, %s3652_s18 }
 0x175   : > { %3402 = vrot.lane.b32.xlu1 %v3401_v14, %s3651_s13  ;;  %v969_v24 = vsel %vm954_vm2, %v932_v16, %v950_v34  ;;  %v987_v54 = vsel %vm954_vm2, %v950_v34, %v932_v16  ;;  %v1026_v45 = vsel %vm917_vm1, %v988_v15, 0.0  ;;  %v606_v60 = vpop.f32.mrb[35].mxu0  ;;  %v4259_v22 = vsel %vm839_vm0, %v817_v38, %v835_v26 }
 0x176   : > { %v1024_v9 = vsel %vm917_vm1, %v987_v54, 0.0  ;;  %v3406_v13 = vpack.i.bf16 %v1026_v45, %v970_v46  ;;  %v4263_v58 = vsel %vm839_vm0, %v835_v26, %v817_v38  ;;  %v650_v42 = vmax.f32 %v604_v30, 0.0 }
 0x177   : > { %v607_v10 = vadd.f32 %v3888_v1, %v606_v60  ;;  %v3416_v34 = vpack.i.bf16 %v1024_v9, %v969_v24  ;;  %v4268_v16 = vsel %vm839_vm0, %v809_v12, %v827_v40  ;;  %v4272_v14 = vsel %vm839_vm0, %v827_v40, %v809_v12 }
 0x178   : > { %3397 = vrot.lane.b32.xlu0 %v3396_v35, %s3651_s13  ;;  %v819_v15 = vrot.slane %v650_v42, 7  ;;  %v3653_v26 = vmov 0.0   ;;  %v934_v30 = vrot.slane %v650_v42, 1 }
 0x179   : > { %v651_v46 = vmax.f32 %v607_v10, 0.0  ;;  %3417 = vrot.lane.b32.xlu1 %v3416_v34, %s3652_s18  ;;  %v918_v38 = vrot.slane %v3653_v26, 1  ;;  %v4892_v10 = vpack.i.bf16 %v3942_v36, %v3935_v31  ;;  %v4893_v34 = vpack.i.bf16 %v3938_v33, %v3930_v27 }
 0x17a   : > { %v4898_v27 = vpack.i.bf16 %v4043_v44, %v4032_v37  ;;  %v4899_v31 = vpack.i.bf16 %v4038_v39, %v4025_v29  ;;  %v4900_v33 = vpack.i.bf16 %v4057_v62, %v4047_v47  ;;  %v4901_v36 = vpack.i.bf16 %v4095_v23, %v4086_v52 }
 0x17b   : > { %v837_v1 = vrot.slane %v651_v46, 7  ;;  %v952_v49 = vrot.slane %v651_v46, 1  ;;  %v3421_v24 = vpack.i.bf16 %v651_v46, %v650_v42  ;;  %v996_v45 = vsel %vm917_vm1, %v918_v38, 0.0 }
 0x17c   : > { %3407 = vrot.lane.b32.xlu0 %v3406_v13, %s3652_s18  ;;  %v3436_v13 = vpack.i.bf16 %v996_v45, %v918_v38  ;;  %v4890_v42 = vpack.i.bf16 %v3899_v11, %v3896_v8  ;;  %v4894_v8 = vpack.i.bf16 %v3981_v59, %v3968_v53  ;;  %v4895_v11 = vpack.i.bf16 %v3974_v55, %v3957_v48 }
 0x17d   : > { %3422 = vrot.lane.b32.xlu1 %v3421_v24, %s3651_s13  ;;  %v971_v12 = vsel %vm954_vm2, %v934_v30, %v952_v49  ;;  %v989_v40 = vsel %vm954_vm2, %v952_v49, %v934_v30  ;;  %v4285_v35 = vsel %vm839_vm0, %v819_v15, %v837_v1  ;;  %v4293_v60 = vsel %vm839_vm0, %v837_v1, %v819_v15 }
 0x17e   : > { %v1028_v54 = vsel %vm917_vm1, %v989_v40, 0.0  ;;  %v894_v59 = vsel %vm801_vm4, %v4102_v28, 0.0  ;;  %v896_v46 = vsel %vm801_vm4, %v4152_v57, 0.0  ;;  %v3521_v57 = vld [vmem:[%s4865_s2 + $0x8] sm:$0xff]  }
 0x17f   : > { %v3426_v9 = vpack.i.bf16 %v1028_v54, %v971_v12 }
 0x180   : > { %3412 = vrot.lane.b32.xlu0 %v3653_v26, %s3651_s13 }
 0x181   : > { %3427 = vrot.lane.b32.xlu1 %v3426_v9, %s3652_s18  ;;  %v898_v9 = vsel %vm801_vm4, %v4158_v43, 0.0 }
 0x184   : > { %3437 = vrot.lane.b32.xlu0 %v3436_v13, %s3652_s18 }
 0x185   : > { %3432 = vrot.lane.b32.xlu1 %v4890_v42, %s3651_s13 }
 0x188   : > { %3447 = vrot.lane.b32.xlu0 %v4892_v10, %s3651_s13 }
 0x189   : > { %3442 = vrot.lane.b32.xlu1 %v4891_v7, %s3652_s18 }
 0x18c   : > { %3457 = vrot.lane.b32.xlu0 %v4894_v8, %s3652_s18 }
 0x18d   : > { %3452 = vrot.lane.b32.xlu1 %v4893_v34, %s3651_s13 }
 0x190   : > { %3467 = vrot.lane.b32.xlu0 %v4896_v20, %s3651_s13 }
 0x191   : > { %3462 = vrot.lane.b32.xlu1 %v4895_v11, %s3652_s18 }
 0x194   : > { %3477 = vrot.lane.b32.xlu0 %v4898_v27, %s3652_s18  ;;  %v900_v27 = vsel %vm801_vm4, %v4188_v17, 0.0 }
 0x195   : > { %3472 = vrot.lane.b32.xlu1 %v4897_v25, %s3651_s13 }
 0x198   : > { %3487 = vrot.lane.b32.xlu0 %v4900_v33, %s3651_s13 }
 0x199   : > { %3482 = vrot.lane.b32.xlu1 %v4899_v31, %s3652_s18 }
 0x19c   : > { %3497 = vrot.lane.b32.xlu0 %v3653_v26, %s3651_s13  ;;  %s3568_s13 = sshll.u32 %s3654_s19, 4  ;;  %s3569_s13 = int_to_ptr.vmem [resolvable:$false] %s3568_s13 }
 0x19d   : > { %3492 = vrot.lane.b32.xlu1 %v4901_v36, %s3652_s18  ;;  %s3570_s11 = scalar_lea.vmem %s3569_s13, 8192 }
 0x1a1   : > { %3502 = vrot.lane.b32.xlu1 %v3436_v13, %s3652_s18  ;;  %s2690_s18 = sshll.u32 %s3809_s22, 8 }
 0x1a2   : > { %s4717_s17 = scalar_lea.vmem [#allocation5], %s2690_s18 }
 0x1a3   : > { %s2594_s23 = sshll.u32 %s4717_s17, 4  ;;  %s4811_s23 = int_to_ptr.vmem [resolvable:$true] %s2594_s23 }
 0x1a4   : > { %s3564_s12 = scalar_lea.vmem %s4811_s23, 4096  ;;  %p3571_p5 = scmp.lt.s32.totalorder %s4811_s23, %s3569_s13 }
 0x1a5   : > { %p3565_p8 = scmp.ne.s32.totalorder %s4811_s23, %s3564_s12  ;;  %p3572_p13 = scmp.lt.s32.totalorder %s3570_s11, %s3564_s12 }
 0x1a7   : > { %p3566_p11 = pnand %p3565_p8, %p4914_p9  ;;  %p3573_p2 = por %p3572_p13, %p3571_p5 }
 0x1a9   : > { %p3567_p0 = pneg %p3566_p11 }
 0x1ab   : > { %p3574_p4 = pnand %p3573_p2, %p3567_p0 }
 0x1c5   : > { %v3328_v48 = vpop.permute.xlu0 %3327 }
 0x1c6   : > { %v3330_v53 = vunpack.i.h.bf16 %v3328_v48  ;;  %v3329_v55 = vunpack.i.l.bf16 %v3328_v48 }
 0x1c8   : > { %v1334_v5 = vsel %vm1319_vm3, %v894_v59, %v3329_v55  ;;  %v1335_v29 = vsel %vm1319_vm3, %v4079_v41, %v3330_v53 }
 0x1c9   : > { %v3333_v56 = vpop.permute.xlu1 %3332 }
 0x1ca   : > { %v3335_v61 = vunpack.i.h.bf16 %v3333_v56  ;;  %v3334_v3 = vunpack.i.l.bf16 %v3333_v56 }
 0x1cc   : > { %v1371_v37 = vsel %vm1356_vm5, %v1334_v5, %v3334_v3  ;;  %v1372_v39 = vsel %vm1356_vm5, %v1335_v29, %v3335_v61  ;;  %v902_v3 = vsel %vm801_vm4, %v4194_v18, 0.0 }
 0x1cd   : > { %v4359_v44 = vpack.c.bf16 %v1372_v39, %v1371_v37 }
 0x1ce   : > { %v3338_v47 = vpop.permute.xlu0 %3337 }
 0x1cf   : > { %3034 = vmatprep.mubr.msk.bf16.mxu1 %vm1472_vm6, %v4359_v44  ;;  %v3340_v62 = vunpack.i.h.bf16 %v3338_v47  ;;  %v3339_v52 = vunpack.i.l.bf16 %v3338_v47 }
 0x1d1   : > { %v1336_v38 = vsel %vm1319_vm3, %v896_v46, %v3339_v52  ;;  %v1337_v30 = vsel %vm1319_vm3, %v4148_v51, %v3340_v62 }
 0x1d2   : > { %v3343_v23 = vpop.permute.xlu0 %3342  ;;  %v3353_v28 = vpop.permute.xlu1 %3352 }
 0x1d3   : > { %v3355_v41 = vunpack.i.h.bf16 %v3353_v28  ;;  %v3354_v15 = vunpack.i.l.bf16 %v3353_v28  ;;  %v3345_v1 = vunpack.i.h.bf16 %v3343_v23  ;;  %v3344_v49 = vunpack.i.l.bf16 %v3343_v23 }
 0x1d5   : > { %v1373_v24 = vsel %vm1356_vm5, %v1336_v38, %v3354_v15  ;;  %v1374_v12 = vsel %vm1356_vm5, %v1337_v30, %v3355_v41  ;;  %v1339_v42 = vsel %vm1319_vm3, %v4131_v21, %v3345_v1  ;;  %v1338_v7 = vsel %vm1319_vm3, %v898_v9, %v3344_v49  ;;  %v3522_v21 = vld [vmem:[%s4865_s2 + $0x10] sm:$0xff]   ;;  %v4902_v30 = vld [vmem:[#allocation19_spill] sm:$0xff] }
 0x1d6   : > { %v4371_v40 = vpack.c.bf16 %v1374_v12, %v1373_v24  ;;  %v3348_v54 = vpop.permute.xlu0 %3347  ;;  %v3363_v45 = vpop.permute.xlu1 %3362  ;;  %v904_v41 = vsel %vm801_vm4, %v4226_v6, 0.0 }
 0x1d7   : > { %v3350_v13 = vunpack.i.h.bf16 %v3348_v54  ;;  %v3349_v51 = vunpack.i.l.bf16 %v3348_v54  ;;  %v3365_v10 = vunpack.i.h.bf16 %v3363_v45  ;;  %v3364_v34 = vunpack.i.l.bf16 %v3363_v45 }
 0x1d8   : > { %3035 = vmatmul.mubr.msk.bf16.vlgmr.msra.gmra.mrb[0].mxu1 %vm1472_vm6, %v4371_v40 }
 0x1d9   : > { %v1375_v8 = vsel %vm1356_vm5, %v1338_v7, %v3349_v51  ;;  %v1376_v11 = vsel %vm1356_vm5, %v1339_v42, %v3350_v13  ;;  %3055 = vmatpush3.bf16.msra.mxu1 %v4122_v19  ;;  %v1341_v36 = vsel %vm1319_vm3, %v4184_v50, %v3365_v10  ;;  %v1340_v19 = vsel %vm1319_vm3, %v900_v27, %v3364_v34  ;;  %v3523_v50 = vld [vmem:[%s4865_s2 + $0x18] sm:$0xff]   ;;  %v3525_v13 = vld [vmem:[%s4865_s2 + $0x28] sm:$0xff]   ;;  %v4903_v10 = vld [vmem:[#allocation18_spill] sm:$0xff] }
 0x1da   : > { %v4387_v20 = vpack.c.bf16 %v1376_v11, %v1375_v8  ;;  %v3358_v43 = vpop.permute.xlu0 %3357  ;;  %v3373_v25 = vpop.permute.xlu1 %3372  ;;  %3056 = vmatprep.subr.bf16.mxu1 %v3521_v57  ;;  %v906_v51 = vsel %vm801_vm4, %v4232_v0, 0.0 }
 0x1db   : > { %v3375_v31 = vunpack.i.h.bf16 %v3373_v25  ;;  %v3374_v33 = vunpack.i.l.bf16 %v3373_v25  ;;  %v3360_v48 = vunpack.i.h.bf16 %v3358_v43  ;;  %v3359_v53 = vunpack.i.l.bf16 %v3358_v43 }
 0x1dc   : > { %3038 = vmatprep.mubr.msk.bf16.mxu1 %vm1472_vm6, %v4387_v20 }
 0x1dd   : > { %v1377_v55 = vsel %vm1356_vm5, %v1340_v19, %v3374_v33  ;;  %v1378_v56 = vsel %vm1356_vm5, %v1341_v36, %v3375_v31  ;;  %3057 = vmatpush3.bf16.msra.mxu1 %v3521_v57  ;;  %v1343_v37 = vsel %vm1319_vm3, %v4167_v32, %v3360_v48  ;;  %v1342_v39 = vsel %vm1319_vm3, %v902_v3, %v3359_v53  ;;  %v3524_v32 = vld [vmem:[%s4865_s2 + $0x20] sm:$0xff]  }
 0x1de   : > { %v4402_v59 = vpack.c.bf16 %v1378_v56, %v1377_v55  ;;  %v3368_v17 = vpop.permute.xlu0 %3367  ;;  %v3383_v61 = vpop.permute.xlu1 %3382  ;;  %3058 = vmatprep.subr.bf16.mxu1 %v3522_v21  ;;  %v4452_v33 = vld [vmem:[%s4865_s2 + $0x60] sm:$0xff]   ;;  %v908_v36 = vsel %vm801_vm4, %v4263_v58, 0.0 }
 0x1df   : > { %v3370_v5 = vunpack.i.h.bf16 %v3368_v17  ;;  %v3369_v29 = vunpack.i.l.bf16 %v3368_v17  ;;  %v3385_v47 = vunpack.i.h.bf16 %v3383_v61  ;;  %v3384_v62 = vunpack.i.l.bf16 %v3383_v61 }
 0x1e0   : > { %3039 = vmatmul.mubr.msk.bf16.gmra.mrb[4].mxu1 %vm1472_vm6, %v4402_v59 }
 0x1e1   : > { %v1379_v52 = vsel %vm1356_vm5, %v1342_v39, %v3369_v29  ;;  %v1380_v23 = vsel %vm1356_vm5, %v1343_v37, %v3370_v5  ;;  %3059 = vmatpush3.bf16.msra.mxu1 %v3522_v21  ;;  %v1345_v1 = vsel %vm1319_vm3, %v4902_v30, %v3385_v47  ;;  %v1344_v49 = vsel %vm1319_vm3, %v904_v41, %v3384_v62 }
 0x1e2   : > { %v4417_v28 = vpack.c.bf16 %v1380_v23, %v1379_v52  ;;  %v3378_v18 = vpop.permute.xlu0 %3377  ;;  %3060 = vmatprep.subr.bf16.mxu1 %v3523_v50  ;;  %v4467_v29 = vrot.slane %v3653_v26, 7 }
 0x1e3   : > { %v3393_v46 = vpop.permute.xlu1 %3392  ;;  %v3380_v24 = vunpack.i.h.bf16 %v3378_v18  ;;  %v3379_v12 = vunpack.i.l.bf16 %v3378_v18 }
 0x1e4   : > { %v3395_v15 = vunpack.i.h.bf16 %v3393_v46  ;;  %v3394_v38 = vunpack.i.l.bf16 %v3393_v46  ;;  %3042 = vmatprep.mubr.msk.bf16.mxu1 %vm1472_vm6, %v4417_v28 }
 0x1e5   : > { %3061 = vmatpush3.bf16.msra.mxu1 %v3523_v50  ;;  %v1347_v34 = vsel %vm1319_vm3, %v4903_v10, %v3380_v24  ;;  %v1346_v8 = vsel %vm1319_vm3, %v906_v51, %v3379_v12 }
 0x1e6   : > { %v1381_v54 = vsel %vm1356_vm5, %v1344_v49, %v3394_v38  ;;  %v1382_v45 = vsel %vm1356_vm5, %v1345_v1, %v3395_v15  ;;  %v3388_v6 = vpop.permute.xlu0 %3387  ;;  %3062 = vmatprep.subr.bf16.mxu1 %v3524_v32 }
 0x1e7   : > { %v4432_v57 = vpack.c.bf16 %v1382_v45, %v1381_v54  ;;  %v3403_v9 = vpop.permute.xlu1 %3402  ;;  %v3390_v42 = vunpack.i.h.bf16 %v3388_v6  ;;  %v3389_v7 = vunpack.i.l.bf16 %v3388_v6 }
 0x1e8   : > { %v3405_v11 = vunpack.i.h.bf16 %v3403_v9  ;;  %v3404_v43 = vunpack.i.l.bf16 %v3403_v9 }
 0x1e9   : > { %3043 = vmatmul.mubr.msk.bf16.gmra.mrb[8].mxu1 %vm1472_vm6, %v4432_v57  ;;  %v1383_v25 = vsel %vm1356_vm5, %v1346_v8, %v3389_v7  ;;  %v1384_v21 = vsel %vm1356_vm5, %v1347_v34, %v3390_v42 }
 0x1ea   : > { %3063 = vmatpush3.bf16.msra.mxu1 %v3524_v32  ;;  %v4447_v27 = vpack.c.bf16 %v1384_v21, %v1383_v25  ;;  %v3398_v0 = vpop.permute.xlu0 %3397  ;;  %v1349_v53 = vsel %vm1319_vm3, %v4259_v22, %v3405_v11  ;;  %v1348_v55 = vsel %vm1319_vm3, %v908_v36, %v3404_v43  ;;  %v910_v22 = vsel %vm801_vm4, %v4244_v63, 0.0  ;;  %v4904_v25 = vld [vmem:[#allocation9_spill] sm:$0xff]  ;;  %v4905_v36 = vld [vmem:[#allocation8_spill] sm:$0xff] }
 0x1eb   : > { %v3418_v31 = vpop.permute.xlu1 %3417  ;;  %3064 = vmatprep.subr.bf16.mxu1 %v3525_v13  ;;  %v3400_v56 = vunpack.i.h.bf16 %v3398_v0  ;;  %v3399_v17 = vunpack.i.l.bf16 %v3398_v0  ;;  %v912_v63 = vsel %vm801_vm4, %v4293_v60, 0.0  ;;  %v882_v21 = vsel %vm801_vm4, %v4904_v25, 0.0  ;;  %v4911_v25 = vld [vmem:[#allocation14_spill] sm:$0xff] }
 0x1ec   : > { %v3420_v19 = vunpack.i.h.bf16 %v3418_v31  ;;  %v3419_v48 = vunpack.i.l.bf16 %v3418_v31  ;;  %3046 = vmatprep.mubr.msk.bf16.mxu1 %vm1472_vm6, %v4447_v27 }
 0x1ed   : > { %v1351_v47 = vsel %vm1319_vm3, %v4240_v4, %v3400_v56  ;;  %v1350_v62 = vsel %vm1319_vm3, %v910_v22, %v3399_v17  ;;  %v4488_v4 = vsel %vm801_vm4, %v4467_v29, 0.0  ;;  %v4906_v22 = vld [vmem:[#allocation12_spill] sm:$0xff] }
 0x1ee   : > { %v1385_v61 = vsel %vm1356_vm5, %v1348_v55, %v3419_v48  ;;  %v1386_v50 = vsel %vm1356_vm5, %v1349_v53, %v3420_v19  ;;  %3065 = vmatpush3.bf16.msra.mxu1 %v3525_v13  ;;  %v3408_v58 = vpop.permute.xlu0 %3407 }
 0x1ef   : > { %v4464_v3 = vpack.c.bf16 %v1386_v50, %v1385_v61  ;;  %v3423_v5 = vpop.permute.xlu1 %3422  ;;  %3098 = vmatprep.subr.bf16.mxu1 %v4452_v33  ;;  %v3410_v37 = vunpack.i.h.bf16 %v3408_v58  ;;  %v3409_v39 = vunpack.i.l.bf16 %v3408_v58 }
 0x1f0   : > { %v3425_v52 = vunpack.i.h.bf16 %v3423_v5  ;;  %v3424_v23 = vunpack.i.l.bf16 %v3423_v5  ;;  %v3527_v5 = vld [vmem:[%s4865_s2 + $0x68] sm:$0xff]  }
 0x1f1   : > { %3047 = vmatmul.mubr.msk.bf16.gmra.mrb[12].mxu1 %vm1472_vm6, %v4464_v3  ;;  %v1387_v26 = vsel %vm1356_vm5, %v1350_v62, %v3409_v39  ;;  %v1388_v18 = vsel %vm1356_vm5, %v1351_v47, %v3410_v37  ;;  %v884_v37 = vsel %vm801_vm4, %v4906_v22, 0.0  ;;  %v4913_v22 = vld [vmem:[#allocation16_spill] sm:$0xff] }
 0x1f2   : > { %v4480_v46 = vpack.c.bf16 %v1388_v18, %v1387_v26  ;;  %v3413_v32 = vpop.permute.xlu0 %3412  ;;  %v1353_v49 = vsel %vm1319_vm3, %v4285_v35, %v3425_v52  ;;  %v1352_v24 = vsel %vm1319_vm3, %v912_v63, %v3424_v23  ;;  %v4907_v52 = vld [vmem:[#allocation11_spill] sm:$0xff] }
 0x1f3   : > { %v3428_v41 = vpop.permute.xlu1 %3427  ;;  %v3415_v15 = vunpack.i.h.bf16 %v3413_v32  ;;  %v3414_v38 = vunpack.i.l.bf16 %v3413_v32 }
 0x1f4   : > { %v3430_v30 = vunpack.i.h.bf16 %v3428_v41  ;;  %v3429_v1 = vunpack.i.l.bf16 %v3428_v41  ;;  %3050 = vmatprep.mubr.msk.bf16.mxu1 %vm1472_vm6, %v4480_v46 }
 0x1f5   : > { %v1321_v54 = vsel %vm1319_vm3, %v4467_v29, %v3415_v15  ;;  %v1320_v45 = vsel %vm1319_vm3, %v4488_v4, %v3414_v38 }
 0x1f6   : > { %v1389_v60 = vsel %vm1356_vm5, %v1352_v24, %v3429_v1  ;;  %v1390_v12 = vsel %vm1356_vm5, %v1353_v49, %v3430_v30  ;;  %v3438_v9 = vpop.permute.xlu0 %3437  ;;  %v3528_v30 = vld [vmem:[%s4865_s2 + $0x70] sm:$0xff]   ;;  %v4908_v1 = vld [vmem:[#allocation13_spill] sm:$0xff] }
 0x1f7   : > { %v4501_v6 = vpack.c.bf16 %v1390_v12, %v1389_v60  ;;  %v3433_v13 = vpop.permute.xlu1 %3432  ;;  %v3440_v35 = vunpack.i.h.bf16 %v3438_v9  ;;  %v3439_v51 = vunpack.i.l.bf16 %v3438_v9  ;;  %v886_v49 = vsel %vm801_vm4, %v4908_v1, 0.0  ;;  %v4909_v12 = vld [vmem:[#allocation10_spill] sm:$0xff] }
 0x1f8   : > { %v3435_v42 = vunpack.i.h.bf16 %v3433_v13  ;;  %v3434_v7 = vunpack.i.l.bf16 %v3433_v13 }
 0x1f9   : > { %3051 = vmatmul.mubr.msk.bf16.gmra.mrb[16].mxu1 %vm1472_vm6, %v4501_v6  ;;  %v1357_v10 = vsel %vm1356_vm5, %v1320_v45, %v3439_v51  ;;  %v1358_v34 = vsel %vm1356_vm5, %v1321_v54, %v3440_v35 }
 0x1fa   : > { %v1393_v8 = vpack.c.bf16 %v1358_v34, %v1357_v10  ;;  %v3448_v43 = vpop.permute.xlu0 %3447  ;;  %v1323_v19 = vsel %vm1319_vm3, %v4905_v36, %v3435_v42  ;;  %v1322_v48 = vsel %vm1319_vm3, %v882_v21, %v3434_v7  ;;  %v3529_v10 = vld [vmem:[%s4865_s2 + $0x78] sm:$0xff]  }
 0x1fb   : > { %v3443_v11 = vpop.permute.xlu1 %3442  ;;  %v3450_v53 = vunpack.i.h.bf16 %v3448_v43  ;;  %v3449_v55 = vunpack.i.l.bf16 %v3448_v43  ;;  %v4910_v34 = vld [vmem:[#allocation15_spill] sm:$0xff] }
 0x1fc   : > { %v3445_v0 = vunpack.i.h.bf16 %v3443_v11  ;;  %v3444_v31 = vunpack.i.l.bf16 %v3443_v11  ;;  %3066 = vmatprep.mubr.msk.bf16.mxu1 %vm1472_vm6, %v1393_v8  ;;  %v888_v8 = vsel %vm801_vm4, %v4910_v34, 0.0 }
 0x1fd   : > { %v1324_v62 = vsel %vm1319_vm3, %v884_v37, %v3449_v55  ;;  %v1325_v23 = vsel %vm1319_vm3, %v4907_v52, %v3450_v53 }
 0x1fe   : > { %v1359_v56 = vsel %vm1356_vm5, %v1322_v48, %v3444_v31  ;;  %v1360_v17 = vsel %vm1356_vm5, %v1323_v19, %v3445_v0  ;;  %v3458_v58 = vpop.permute.xlu0 %3457 }
 0x1ff   : > { %v1394_v61 = vpack.c.bf16 %v1360_v17, %v1359_v56  ;;  %v3453_v50 = vpop.permute.xlu1 %3452  ;;  %v3460_v39 = vunpack.i.h.bf16 %v3458_v58  ;;  %v3459_v47 = vunpack.i.l.bf16 %v3458_v58  ;;  %v3530_v17 = vld [vmem:[%s4865_s2 + $0x80] sm:$0xff]  }
 0x200   : > { %v3455_v26 = vunpack.i.h.bf16 %v3453_v50  ;;  %v3454_v18 = vunpack.i.l.bf16 %v3453_v50 }
 0x201   : > { %3022 = vmatprep.mubr.msk.bf16.mxu0 %vm1472_vm6, %v1394_v61  ;;  %3067 = vmatmul.mubr.msk.bf16.vlgmr.msra.gmra.mrb[20].mxu1 %vm1472_vm6, %v1394_v61  ;;  %v1361_v63 = vsel %vm1356_vm5, %v1324_v62, %v3459_v47  ;;  %v1362_v32 = vsel %vm1356_vm5, %v1325_v23, %v3460_v39  ;;  %v4912_v61 = vld [vmem:[#allocation17_spill] sm:$0xff] }
 0x202   : > { %3099 = vmatpush3.bf16.msra.mxu1 %v4452_v33  ;;  %v4530_v41 = vpack.c.bf16 %v1362_v32, %v1361_v63  ;;  %v3468_v38 = vpop.permute.xlu0 %3467  ;;  %v1327_v54 = vsel %vm1319_vm3, %v4909_v12, %v3455_v26  ;;  %v1326_v33 = vsel %vm1319_vm3, %v886_v49, %v3454_v18  ;;  %v890_v50 = vsel %vm801_vm4, %v4912_v61, 0.0  ;;  %v3531_v63 = vld [vmem:[%s4865_s2 + $0x88] sm:$0xff]  }
 0x203   : > { %v3463_v15 = vpop.permute.xlu1 %3462  ;;  %3100 = vmatprep.subr.bf16.mxu1 %v3527_v5  ;;  %v3470_v45 = vunpack.i.h.bf16 %v3468_v38  ;;  %v3469_v9 = vunpack.i.l.bf16 %v3468_v38  ;;  %v892_v32 = vsel %vm801_vm4, %v4272_v14, 0.0 }
 0x204   : > { %v3465_v24 = vunpack.i.h.bf16 %v3463_v15  ;;  %v3464_v60 = vunpack.i.l.bf16 %v3463_v15  ;;  %3023 = vmatmul.mubr.msk.bf16.vlgmr.msra.gmra.mrb[36].mxu0 %vm1472_vm6, %v4530_v41  ;;  %3070 = vmatprep.mubr.msk.bf16.mxu1 %vm1472_vm6, %v4530_v41 }
 0x205   : > { %v1329_v21 = vsel %vm1319_vm3, %v4911_v25, %v3470_v45  ;;  %v1328_v0 = vsel %vm1319_vm3, %v888_v8, %v3469_v9 }
 0x206   : > { %v1363_v13 = vsel %vm1356_vm5, %v1326_v33, %v3464_v60  ;;  %v1364_v35 = vsel %vm1356_vm5, %v1327_v54, %v3465_v24  ;;  %3101 = vmatpush3.bf16.msra.mxu1 %v3527_v5  ;;  %v3478_v7 = vpop.permute.xlu0 %3477 }
 0x207   : > { %v4547_v51 = vpack.c.bf16 %v1364_v35, %v1363_v13  ;;  %v3473_v42 = vpop.permute.xlu1 %3472  ;;  %3102 = vmatprep.subr.bf16.mxu1 %v3528_v30  ;;  %v3480_v11 = vunpack.i.h.bf16 %v3478_v7  ;;  %v3479_v43 = vunpack.i.l.bf16 %v3478_v7 }
 0x208   : > { %v3475_v31 = vunpack.i.h.bf16 %v3473_v42  ;;  %v3474_v36 = vunpack.i.l.bf16 %v3473_v42 }
 0x209   : > { %3026 = vmatprep.mubr.msk.bf16.mxu0 %vm1472_vm6, %v4547_v51  ;;  %3071 = vmatmul.mubr.msk.bf16.gmra.mrb[24].mxu1 %vm1472_vm6, %v4547_v51  ;;  %v1365_v19 = vsel %vm1356_vm5, %v1328_v0, %v3479_v43  ;;  %v1366_v48 = vsel %vm1356_vm5, %v1329_v21, %v3480_v11 }
 0x20a   : > { %3103 = vmatpush3.bf16.msra.mxu1 %v3528_v30  ;;  %v1397_v53 = vpack.c.bf16 %v1366_v48, %v1365_v19  ;;  %v3488_v56 = vpop.permute.xlu0 %3487  ;;  %v1331_v37 = vsel %vm1319_vm3, %v4913_v22, %v3475_v31  ;;  %v1330_v39 = vsel %vm1319_vm3, %v890_v50, %v3474_v36 }
 0x20b   : > { %v3483_v55 = vpop.permute.xlu1 %3482  ;;  %3104 = vmatprep.subr.bf16.mxu1 %v3529_v10  ;;  %v3490_v47 = vunpack.i.h.bf16 %v3488_v56  ;;  %v3489_v62 = vunpack.i.l.bf16 %v3488_v56 }
 0x20c   : > { %v3485_v58 = vunpack.i.h.bf16 %v3483_v55  ;;  %v3484_v5 = vunpack.i.l.bf16 %v3483_v55  ;;  %3027 = vmatmul.mubr.msk.bf16.gmra.mrb[40].mxu0 %vm1472_vm6, %v1397_v53  ;;  %3074 = vmatprep.mubr.msk.bf16.mxu1 %vm1472_vm6, %v1397_v53 }
 0x20d   : > { %v1333_v30 = vsel %vm1319_vm3, %v4268_v16, %v3490_v47  ;;  %v1332_v1 = vsel %vm1319_vm3, %v892_v32, %v3489_v62 }
 0x20e   : > { %v1367_v52 = vsel %vm1356_vm5, %v1330_v39, %v3484_v5  ;;  %v1368_v23 = vsel %vm1356_vm5, %v1331_v37, %v3485_v58  ;;  %3105 = vmatpush3.bf16.msra.mxu1 %v3529_v10  ;;  %v3498_v2 = vpop.permute.xlu0 %3497  ;;  %v4653_v10 = vld [vmem:[%s4868_s5] ss:$0 sm:$0xff] }
 0x20f   : > { %v1398_v26 = vpack.c.bf16 %v1368_v23, %v1367_v52  ;;  %v3493_v18 = vpop.permute.xlu1 %3492  ;;  %3106 = vmatprep.subr.bf16.mxu1 %v3530_v17  ;;  %v3500_v16 = vunpack.i.h.bf16 %v3498_v2  ;;  %v3499_v14 = vunpack.i.l.bf16 %v3498_v2 }
 0x210   : > { %v3495_v15 = vunpack.i.h.bf16 %v3493_v18  ;;  %v3494_v38 = vunpack.i.l.bf16 %v3493_v18 }
 0x211   : > { %3030 = vmatprep.mubr.msk.bf16.mxu0 %vm1472_vm6, %v1398_v26  ;;  %3075 = vmatmul.mubr.msk.bf16.gmra.mrb[28].mxu1 %vm1472_vm6, %v1398_v26 }
 0x212   : > { %v1369_v49 = vsel %vm1356_vm5, %v1332_v1, %v3494_v38  ;;  %v1370_v24 = vsel %vm1356_vm5, %v1333_v30, %v3495_v15  ;;  %3107 = vmatpush3.bf16.msra.mxu1 %v3530_v17 }
 0x213   : > { %v1399_v60 = vpack.c.bf16 %v1370_v24, %v1369_v49  ;;  %3108 = vmatprep.subr.bf16.mxu1 %v3531_v63 }
 0x215   : > { %3031 = vmatmul.mubr.msk.bf16.gmra.mrb[44].mxu0 %vm1472_vm6, %v1399_v60  ;;  %3078 = vmatprep.mubr.msk.bf16.mxu1 %vm1472_vm6, %v1399_v60 }
 0x216   : > { %3109 = vmatpush3.bf16.msra.mxu1 %v3531_v63 }
 0x219   : > { %3079 = vmatmul.mubr.msk.bf16.gmra.mrb[0].mxu1 %vm1472_vm6, %v4359_v44 }
 0x21a   : > { %3082 = vmatprep.mubr.msk.bf16.mxu1 %vm1472_vm6, %v4371_v40 }
 0x221   : > { %3083 = vmatmul.mubr.msk.bf16.gmra.mrb[4].mxu1 %vm1472_vm6, %v4387_v20 }
 0x222   : > { %3086 = vmatprep.mubr.msk.bf16.mxu1 %vm1472_vm6, %v4402_v59 }
 0x229   : > { %3087 = vmatmul.mubr.msk.bf16.gmra.mrb[8].mxu1 %vm1472_vm6, %v4417_v28 }
 0x22a   : > { %3090 = vmatprep.mubr.msk.bf16.mxu1 %vm1472_vm6, %v4432_v57 }
 0x231   : > { %3091 = vmatmul.mubr.msk.bf16.gmra.mrb[12].mxu1 %vm1472_vm6, %v4447_v27 }
 0x232   : > { %3094 = vmatprep.mubr.msk.bf16.mxu1 %vm1472_vm6, %v4464_v3 }
 0x239   : > { %3095 = vmatmul.mubr.msk.bf16.gmra.mrb[16].mxu1 %vm1472_vm6, %v4480_v46 }
 0x23a   : > { %3110 = vmatprep.mubr.msk.bf16.mxu1 %vm1472_vm6, %v4530_v41 }
 0x241   : > { %3111 = vmatmul.mubr.msk.bf16.vlgmr.msra.gmra.mrb[20].mxu1 %vm1472_vm6, %v4547_v51 }
 0x242   : > { %3114 = vmatprep.mubr.msk.bf16.mxu1 %vm1472_vm6, %v1397_v53 }
 0x249   : > { %3115 = vmatmul.mubr.msk.bf16.gmra.mrb[24].mxu1 %vm1472_vm6, %v1398_v26 }
 0x24a   : > { %3118 = vmatprep.mubr.msk.bf16.mxu1 %vm1472_vm6, %v1399_v60 }
 0x251   : > { %3119 = vmatmul.mubr.msk.bf16.gmra.mrb[28].mxu1 %vm1472_vm6, %v4359_v44  ;;  %v3503_v44 = vpop.permute.xlu1 %3502 }
 0x252   : > { %3122 = vmatprep.mubr.msk.bf16.mxu1 %vm1472_vm6, %v4371_v40  ;;  %v3532_v40 = vld [vmem:[%s4866_s3] sm:$0xff]  }
 0x253   : > { %3142 = vmatprep.subr.bf16.mxu0 %v3532_v40 }
 0x254   : > { %3143 = vmatpush3.bf16.msra.mxu0 %v3532_v40 }
 0x259   : > { %3123 = vmatmul.mubr.msk.bf16.gmra.mrb[0].mxu1 %vm1472_vm6, %v4387_v20  ;;  %v3505_v20 = vunpack.i.h.bf16 %v3503_v44 }
 0x25a   : > { %3126 = vmatprep.mubr.msk.bf16.mxu1 %vm1472_vm6, %v4402_v59  ;;  %v3504_v59 = vunpack.i.l.bf16 %v3503_v44 }
 0x261   : > { %3127 = vmatmul.mubr.msk.bf16.gmra.mrb[4].mxu1 %vm1472_vm6, %v4417_v28  ;;  %v1355_v28 = vsel %vm1319_vm3, %v4467_v29, %v3500_v16  ;;  %v3533_v29 = vld [vmem:[%s4866_s3 + $0x8] sm:$0xff]  }
 0x262   : > { %3130 = vmatprep.mubr.msk.bf16.mxu1 %vm1472_vm6, %v4432_v57  ;;  %v1354_v57 = vsel %vm1319_vm3, %v4488_v4, %v3499_v14  ;;  %3144 = vmatprep.subr.bf16.mxu0 %v3533_v29 }
 0x263   : > { %3145 = vmatpush3.bf16.msra.mxu0 %v3533_v29 }
 0x269   : > { %3131 = vmatmul.mubr.msk.bf16.gmra.mrb[8].mxu1 %vm1472_vm6, %v4447_v27  ;;  %v1391_v27 = vsel %vm1356_vm5, %v1354_v57, %v3504_v59 }
 0x26a   : > { %3134 = vmatprep.mubr.msk.bf16.mxu1 %vm1472_vm6, %v4464_v3  ;;  %v1392_v3 = vsel %vm1356_vm5, %v1355_v28, %v3505_v20 }
 0x26b   : > { %v1410_v41 = vpack.c.bf16 %v1392_v3, %v1391_v27 }
 0x271   : > { %3135 = vmatmul.mubr.msk.bf16.gmra.mrb[12].mxu1 %vm1472_vm6, %v4480_v46 }
 0x272   : > { %3138 = vmatprep.mubr.msk.bf16.mxu1 %vm1472_vm6, %v4501_v6 }
 0x279   : > { %3139 = vmatmul.mubr.msk.bf16.gmra.mrb[16].mxu1 %vm1472_vm6, %v1410_v41 }
 0x2d7   : > { %v3024_v4 = vpop.f32.mrb[36].mxu0 }
 0x2d8   : > { %v1555_v12 = vpop.f32.mrb[37].mxu0 }
 0x2d9   : > { %v3025_v54 = vpop.f32.mrb[38].mxu0 }
 0x2da   : > { %v1558_v46 = vpop.f32.mrb[39].mxu0 }
 0x2df   : > { %v3028_v33 = vpop.f32.mrb[40].mxu0 }
 0x2e0   : > { %v1571_v45 = vpop.f32.mrb[41].mxu0 }
 0x2e1   : > { %v3029_v6 = vpop.f32.mrb[42].mxu0 }
 0x2e2   : > { %v1574_v9 = vpop.f32.mrb[43].mxu0 }
 0x2e8   : > { %v3032_v13 = vpop.f32.mrb[44].mxu0 }
 0x2e9   : > { %v1587_v35 = vpop.f32.mrb[45].mxu0 }
 0x2ea   : > { %v3033_v51 = vpop.f32.mrb[46].mxu0 }
 0x2eb   : > { %v1590_v42 = vpop.f32.mrb[47].mxu0 }
 0x314   : > { %v3112_v7 = vpop.f32.mrb[20].mxu1 }
 0x315   : > { %v3190_v34 = vadd.f32 %v3112_v7, %v3024_v4  ;;  %v1968_v8 = vpop.f32.mrb[21].mxu1 }
 0x316   : > { %v3191_v11 = vadd.f32 %v1968_v8, %v1555_v12  ;;  %v3113_v43 = vpop.f32.mrb[22].mxu1 }
 0x317   : > { %v2136_v25 = vadd.f32 %v3190_v34, %v4653_v10  ;;  %v3192_v21 = vadd.f32 %v3113_v43, %v3025_v54  ;;  %v1971_v0 = vpop.f32.mrb[23].mxu1 }
 0x318   : > { %v2134_v31 = vadd.f32 %v3191_v11, %v4653_v10  ;;  %v3193_v36 = vadd.f32 %v1971_v0, %v1558_v46 }
 0x319   : > { %v2137_v19 = vadd.f32 %v3192_v21, %v4653_v10  ;;  %v2168_v53 = vmax.f32 %v2136_v25, 0.0 }
 0x31a   : > { %v2135_v48 = vadd.f32 %v3193_v36, %v4653_v10  ;;  %v2166_v56 = vmax.f32 %v2134_v31, 0.0 }
 0x31b   : > { %v2169_v55 = vmax.f32 %v2137_v19, 0.0 }
 0x31c   : > { %v2167_v17 = vmax.f32 %v2135_v48, 0.0  ;;  %v3116_v61 = vpop.f32.mrb[24].mxu1 }
 0x31d   : > { %v2199_v50 = vpack.c.bf16 %v2169_v55, %v2168_v53  ;;  %v3194_v58 = vadd.f32 %v3116_v61, %v3028_v33  ;;  %v1984_v5 = vpop.f32.mrb[25].mxu1 }
 0x31e   : > { %v2198_v22 = vpack.c.bf16 %v2167_v17, %v2166_v56  ;;  %v3195_v37 = vadd.f32 %v1984_v5, %v1571_v45  ;;  %v3117_v39 = vpop.f32.mrb[26].mxu1 }
 0x31f   : > { %v2140_v47 = vadd.f32 %v3194_v58, %v4653_v10  ;;  %v3196_v62 = vadd.f32 %v3117_v39, %v3029_v6  ;;  %v1987_v52 = vpop.f32.mrb[27].mxu1 }
 0x320   : > { %v2138_v23 = vadd.f32 %v3195_v37, %v4653_v10  ;;  %v3197_v26 = vadd.f32 %v1987_v52, %v1574_v9  ;;  %3146 = vmatprep.mubr.msk.bf16.mxu0 %vm1319_vm3, %v2198_v22 }
 0x321   : > { %v2141_v18 = vadd.f32 %v3196_v62, %v4653_v10  ;;  %3147 = vmatmul.mubr.msk.bf16.vlgmr.msra.gmra.mrb[48].mxu0 %vm1319_vm3, %v2199_v50  ;;  %v2172_v32 = vmax.f32 %v2140_v47, 0.0 }
 0x322   : > { %v2139_v63 = vadd.f32 %v3197_v26, %v4653_v10  ;;  %v2170_v38 = vmax.f32 %v2138_v23, 0.0 }
 0x323   : > { %v2173_v15 = vmax.f32 %v2141_v18, 0.0 }
 0x324   : > { %v2171_v30 = vmax.f32 %v2139_v63, 0.0  ;;  %v3120_v1 = vpop.f32.mrb[28].mxu1 }
 0x325   : > { %v2201_v49 = vpack.c.bf16 %v2173_v15, %v2172_v32  ;;  %v3198_v24 = vadd.f32 %v3120_v1, %v3032_v13  ;;  %v2000_v60 = vpop.f32.mrb[29].mxu1 }
 0x326   : > { %v2200_v2 = vpack.c.bf16 %v2171_v30, %v2170_v38  ;;  %v3199_v16 = vadd.f32 %v2000_v60, %v1587_v35  ;;  %v3121_v14 = vpop.f32.mrb[30].mxu1 }
 0x327   : > { %v2144_v44 = vadd.f32 %v3198_v24, %v4653_v10  ;;  %v3200_v40 = vadd.f32 %v3121_v14, %v3033_v51  ;;  %v2003_v20 = vpop.f32.mrb[31].mxu1 }
 0x328   : > { %v2142_v59 = vadd.f32 %v3199_v16, %v4653_v10  ;;  %v3201_v28 = vadd.f32 %v2003_v20, %v1590_v42  ;;  %3150 = vmatprep.mubr.msk.bf16.mxu0 %vm1319_vm3, %v2200_v2 }
 0x329   : > { %v2145_v57 = vadd.f32 %v3200_v40, %v4653_v10  ;;  %3151 = vmatmul.mubr.msk.bf16.gmra.mrb[52].mxu0 %vm1319_vm3, %v2201_v49  ;;  %v2176_v3 = vmax.f32 %v2144_v44, 0.0 }
 0x32a   : > { %v2143_v27 = vadd.f32 %v3201_v28, %v4653_v10  ;;  %v2174_v29 = vmax.f32 %v2142_v59, 0.0 }
 0x32b   : > { %v2177_v41 = vmax.f32 %v2145_v57, 0.0 }
 0x32c   : > { %v2175_v4 = vmax.f32 %v2143_v27, 0.0  ;;  %v3124_v12 = vpop.f32.mrb[0].mxu1 }
 0x32d   : > { %v2203_v54 = vpack.c.bf16 %v2177_v41, %v2176_v3  ;;  %v2148_v46 = vadd.f32 %v3124_v12, %v4653_v10  ;;  %v2016_v33 = vpop.f32.mrb[1].mxu1 }
 0x32e   : > { %v2202_v45 = vpack.c.bf16 %v2175_v4, %v2174_v29  ;;  %v2146_v6 = vadd.f32 %v4653_v10, %v2016_v33  ;;  %v3125_v9 = vpop.f32.mrb[2].mxu1 }
 0x32f   : > { %v2149_v13 = vadd.f32 %v3125_v9, %v4653_v10  ;;  %v2019_v35 = vpop.f32.mrb[3].mxu1  ;;  %v2180_v42 = vmax.f32 %v2148_v46, 0.0 }
 0x330   : > { %v2147_v51 = vadd.f32 %v4653_v10, %v2019_v35  ;;  %3154 = vmatprep.mubr.msk.bf16.mxu0 %vm1319_vm3, %v2202_v45  ;;  %v2178_v34 = vmax.f32 %v2146_v6, 0.0 }
 0x331   : > { %v2181_v7 = vmax.f32 %v2149_v13, 0.0  ;;  %3155 = vmatmul.mubr.msk.bf16.gmra.mrb[56].mxu0 %vm1319_vm3, %v2203_v54 }
 0x332   : > { %v2179_v8 = vmax.f32 %v2147_v51, 0.0  ;;  %v4706_v51 = vld [vmem:[%s4869_s6] ss:$0 sm:$0xff] }
 0x333   : > { %v2205_v11 = vpack.c.bf16 %v2181_v7, %v2180_v42 }
 0x334   : > { %v2204_v43 = vpack.c.bf16 %v2179_v8, %v2178_v34  ;;  %v3128_v25 = vpop.f32.mrb[4].mxu1  ;;  %v2791_v34 = vld [vmem:[%s3813_s30 + $0x10] sm:$0xff] }
 0x335   : > { %v2152_v21 = vadd.f32 %v3128_v25, %v4653_v10  ;;  %v2032_v0 = vpop.f32.mrb[5].mxu1 }
 0x336   : > { %v2150_v31 = vadd.f32 %v4653_v10, %v2032_v0  ;;  %v3129_v36 = vpop.f32.mrb[6].mxu1  ;;  %3158 = vmatprep.mubr.msk.bf16.mxu0 %vm1319_vm3, %v2204_v43  ;;  %v2794_v43 = vld [vmem:[%s3813_s30 + $0x28] sm:$0xff] }
 0x337   : > { %v2153_v19 = vadd.f32 %v3129_v36, %v4653_v10  ;;  %v2035_v48 = vpop.f32.mrb[7].mxu1  ;;  %v2184_v55 = vmax.f32 %v2152_v21, 0.0 }
 0x338   : > { %v2151_v53 = vadd.f32 %v4653_v10, %v2035_v48  ;;  %v2182_v17 = vmax.f32 %v2150_v31, 0.0  ;;  %v2792_v31 = vld [vmem:[%s3813_s30 + $0x18] sm:$0xff] }
 0x339   : > { %v2185_v56 = vmax.f32 %v2153_v19, 0.0  ;;  %3159 = vmatmul.mubr.msk.bf16.gmra.mrb[60].mxu0 %vm1319_vm3, %v2205_v11 }
 0x33a   : > { %v2183_v61 = vmax.f32 %v2151_v53, 0.0 }
 0x33b   : > { %v2207_v50 = vpack.c.bf16 %v2185_v56, %v2184_v55 }
 0x33c   : > { %v2206_v58 = vpack.c.bf16 %v2183_v61, %v2182_v17  ;;  %v3132_v5 = vpop.f32.mrb[8].mxu1 }
 0x33d   : > { %v2156_v22 = vadd.f32 %v3132_v5, %v4653_v10  ;;  %v2048_v37 = vpop.f32.mrb[9].mxu1 }
 0x33e   : > { %v2154_v39 = vadd.f32 %v4653_v10, %v2048_v37  ;;  %v3133_v47 = vpop.f32.mrb[10].mxu1  ;;  %3162 = vmatprep.mubr.msk.bf16.mxu0 %vm1319_vm3, %v2206_v58  ;;  %v2797_v58 = vld [vmem:[%s3813_s30 + $0x40] sm:$0xff]  ;;  %v2795_v37 = vld [vmem:[%s3813_s30 + $0x30] sm:$0xff] }
 0x33f   : > { %v2157_v62 = vadd.f32 %v3133_v47, %v4653_v10  ;;  %v2051_v52 = vpop.f32.mrb[11].mxu1  ;;  %v2188_v26 = vmax.f32 %v2156_v22, 0.0 }
 0x340   : > { %v2155_v23 = vadd.f32 %v4653_v10, %v2051_v52  ;;  %v2186_v63 = vmax.f32 %v2154_v39, 0.0 }
 0x341   : > { %v2189_v18 = vmax.f32 %v2157_v62, 0.0  ;;  %3163 = vmatmul.mubr.msk.bf16.gmra.mrb[64].mxu0 %vm1319_vm3, %v2207_v50  ;;  %v2798_v62 = vld [vmem:[%s3813_s30 + $0x48] sm:$0xff] }
 0x342   : > { %v2187_v32 = vmax.f32 %v2155_v23, 0.0 }
 0x343   : > { %v2209_v15 = vpack.c.bf16 %v2189_v18, %v2188_v26  ;;  %v2796_v18 = vld [vmem:[%s3813_s30 + $0x38] sm:$0xff] }
 0x344   : > { %v2208_v38 = vpack.c.bf16 %v2187_v32, %v2186_v63  ;;  %v3136_v30 = vpop.f32.mrb[12].mxu1 }
 0x345   : > { %v2160_v1 = vadd.f32 %v3136_v30, %v4653_v10  ;;  %v2064_v49 = vpop.f32.mrb[13].mxu1 }
 0x346   : > { %v2158_v24 = vadd.f32 %v4653_v10, %v2064_v49  ;;  %v3137_v60 = vpop.f32.mrb[14].mxu1  ;;  %3166 = vmatprep.mubr.msk.bf16.mxu0 %vm1319_vm3, %v2208_v38 }
 0x347   : > { %v2161_v2 = vadd.f32 %v3137_v60, %v4653_v10  ;;  %v2067_v16 = vpop.f32.mrb[15].mxu1  ;;  %v2192_v44 = vmax.f32 %v2160_v1, 0.0 }
 0x348   : > { %v2159_v14 = vadd.f32 %v4653_v10, %v2067_v16  ;;  %v2190_v20 = vmax.f32 %v2158_v24, 0.0 }
 0x349   : > { %v2193_v40 = vmax.f32 %v2161_v2, 0.0  ;;  %3167 = vmatmul.mubr.msk.bf16.gmra.mrb[68].mxu0 %vm1319_vm3, %v2209_v15  ;;  %v2801_v2 = vld [vmem:[%s3813_s30 + $0x60] sm:$0xff] }
 0x34a   : > { %v2191_v59 = vmax.f32 %v2159_v14, 0.0 }
 0x34b   : > { %v2211_v28 = vpack.c.bf16 %v2193_v40, %v2192_v44  ;;  %v2799_v44 = vld [vmem:[%s3813_s30 + $0x50] sm:$0xff] }
 0x34c   : > { %v2210_v57 = vpack.c.bf16 %v2191_v59, %v2190_v20  ;;  %v3140_v27 = vpop.f32.mrb[16].mxu1  ;;  %v2802_v59 = vld [vmem:[%s3813_s30 + $0x68] sm:$0xff] }
 0x34d   : > { %v2164_v3 = vadd.f32 %v3140_v27, %v4653_v10  ;;  %v2080_v41 = vpop.f32.mrb[17].mxu1 }
 0x34e   : > { %v2162_v29 = vadd.f32 %v4653_v10, %v2080_v41  ;;  %v3141_v4 = vpop.f32.mrb[18].mxu1  ;;  %3170 = vmatprep.mubr.msk.bf16.mxu0 %vm1319_vm3, %v2210_v57 }
 0x34f   : > { %v2165_v12 = vadd.f32 %v3141_v4, %v4653_v10  ;;  %v2083_v54 = vpop.f32.mrb[19].mxu1  ;;  %v2196_v33 = vmax.f32 %v2164_v3, 0.0  ;;  %v2800_v3 = vld [vmem:[%s3813_s30 + $0x58] sm:$0xff] }
 0x350   : > { %v2163_v46 = vadd.f32 %v4653_v10, %v2083_v54  ;;  %v2194_v6 = vmax.f32 %v2162_v29, 0.0  ;;  %v2793_v10 = vld [vmem:[%s3813_s30 + $0x20] sm:$0xff] }
 0x351   : > { %v2197_v45 = vmax.f32 %v2165_v12, 0.0  ;;  %3171 = vmatmul.mubr.msk.bf16.gmra.mrb[72].mxu0 %vm1319_vm3, %v2211_v28 }
 0x352   : > { %v2195_v9 = vmax.f32 %v2163_v46, 0.0 }
 0x353   : > { %v2213_v13 = vpack.c.bf16 %v2197_v45, %v2196_v33 }
 0x354   : > { %v2212_v35 = vpack.c.bf16 %v2195_v9, %v2194_v6  ;;  %v2805_v9 = vld [vmem:[%s3813_s30 + $0x80] sm:$0xff] }
 0x356   : > { %3174 = vmatprep.mubr.msk.bf16.mxu0 %vm1319_vm3, %v2212_v35 }
 0x359   : > { %3175 = vmatmul.mubr.msk.bf16.gmra.mrb[76].mxu0 %vm1319_vm3, %v2213_v13 }
 0x3f4   : > { %v3148_v42 = vpop.f32.mrb[48].mxu0 }
 0x3f5   : > { %v2363_v7 = vadd.f32 %v3148_v42, %v4706_v51  ;;  %v2354_v8 = vpop.f32.mrb[49].mxu0 }
 0x3f6   : > { %v2355_v11 = vadd.f32 %v4706_v51, %v2354_v8  ;;  %v3149_v25 = vpop.f32.mrb[50].mxu0 }
 0x3f7   : > { %v2483_v21 = vadd.f32 %v2793_v10, %v2363_v7  ;;  %v2366_v0 = vadd.f32 %v3149_v25, %v4706_v51  ;;  %v2357_v36 = vpop.f32.mrb[51].mxu0  ;;  %v2803_v10 = vld [vmem:[%s3813_s30 + $0x70] sm:$0xff]  ;;  %v2804_v25 = vld [vmem:[%s3813_s30 + $0x78] sm:$0xff] }
 0x3f8   : > { %v2481_v19 = vadd.f32 %v2791_v34, %v2355_v11  ;;  %v2358_v48 = vadd.f32 %v4706_v51, %v2357_v36  ;;  %v2806_v34 = vld [vmem:[%s3813_s30 + $0x88] sm:$0xff] }
 0x3f9   : > { %v2515_v53 = vmax.f32 %v2483_v21, 0.0  ;;  %v2484_v55 = vadd.f32 %v2794_v43, %v2366_v0 }
 0x3fa   : > { %v2513_v56 = vmax.f32 %v2481_v19, 0.0  ;;  %v2482_v17 = vadd.f32 %v2792_v31, %v2358_v48 }
 0x3fb   : > { %2547 = vst [vmem:[%s4717_s17 + $0x10] sm:$0xff] %v2515_v53  ;;  %v2516_v61 = vmax.f32 %v2484_v55, 0.0 }
 0x3fc   : > { %2545 = vst [vmem:[%s4717_s17] sm:$0xff] %v2513_v56  ;;  %v2514_v50 = vmax.f32 %v2482_v17, 0.0  ;;  %v3152_v5 = vpop.f32.mrb[52].mxu0  ;;  %v2809_v17 = vld [vmem:[%s3813_s30 + $0xa0] sm:$0xff] }
 0x3fd   : > { %2548 = vst [vmem:[%s4717_s17 + $0x18] sm:$0xff] %v2516_v61  ;;  %v2379_v22 = vadd.f32 %v3152_v5, %v4706_v51  ;;  %v2370_v39 = vpop.f32.mrb[53].mxu0 }
 0x3fe   : > { %2546 = vst [vmem:[%s4717_s17 + $0x8] sm:$0xff] %v2514_v50  ;;  %v2371_v47 = vadd.f32 %v4706_v51, %v2370_v39  ;;  %v3153_v52 = vpop.f32.mrb[54].mxu0 }
 0x3ff   : > { %v2487_v23 = vadd.f32 %v2797_v58, %v2379_v22  ;;  %v2382_v26 = vadd.f32 %v3153_v52, %v4706_v51  ;;  %v2373_v63 = vpop.f32.mrb[55].mxu0  ;;  %v2807_v58 = vld [vmem:[%s3813_s30 + $0x90] sm:$0xff]  ;;  %v2808_v52 = vld [vmem:[%s3813_s30 + $0x98] sm:$0xff] }
 0x400   : > { %v2485_v32 = vadd.f32 %v2795_v37, %v2371_v47  ;;  %v2374_v15 = vadd.f32 %v4706_v51, %v2373_v63  ;;  %v2810_v37 = vld [vmem:[%s3813_s30 + $0xa8] sm:$0xff] }
 0x401   : > { %v2519_v38 = vmax.f32 %v2487_v23, 0.0  ;;  %v2488_v30 = vadd.f32 %v2798_v62, %v2382_v26 }
 0x402   : > { %v2517_v1 = vmax.f32 %v2485_v32, 0.0  ;;  %v2486_v49 = vadd.f32 %v2796_v18, %v2374_v15 }
 0x403   : > { %2551 = vst [vmem:[%s4717_s17 + $0x30] sm:$0xff] %v2519_v38  ;;  %v2520_v24 = vmax.f32 %v2488_v30, 0.0 }
 0x404   : > { %2549 = vst [vmem:[%s4717_s17 + $0x20] sm:$0xff] %v2517_v1  ;;  %v2518_v60 = vmax.f32 %v2486_v49, 0.0  ;;  %v3156_v16 = vpop.f32.mrb[56].mxu0  ;;  %v2813_v49 = vld [vmem:[%s3813_s30 + $0xc0] sm:$0xff] }
 0x405   : > { %2552 = vst [vmem:[%s4717_s17 + $0x38] sm:$0xff] %v2520_v24  ;;  %v2395_v14 = vadd.f32 %v3156_v16, %v4706_v51  ;;  %v2386_v40 = vpop.f32.mrb[57].mxu0 }
 0x406   : > { %2550 = vst [vmem:[%s4717_s17 + $0x28] sm:$0xff] %v2518_v60  ;;  %v2387_v20 = vadd.f32 %v4706_v51, %v2386_v40  ;;  %v3157_v28 = vpop.f32.mrb[58].mxu0 }
 0x407   : > { %v2491_v57 = vadd.f32 %v2801_v2, %v2395_v14  ;;  %v2398_v27 = vadd.f32 %v3157_v28, %v4706_v51  ;;  %v2389_v41 = vpop.f32.mrb[59].mxu0  ;;  %v2811_v2 = vld [vmem:[%s3813_s30 + $0xb0] sm:$0xff]  ;;  %v2812_v28 = vld [vmem:[%s3813_s30 + $0xb8] sm:$0xff] }
 0x408   : > { %v2489_v29 = vadd.f32 %v2799_v44, %v2387_v20  ;;  %v2390_v4 = vadd.f32 %v4706_v51, %v2389_v41  ;;  %v2814_v44 = vld [vmem:[%s3813_s30 + $0xc8] sm:$0xff] }
 0x409   : > { %v2523_v12 = vmax.f32 %v2491_v57, 0.0  ;;  %v2492_v54 = vadd.f32 %v2802_v59, %v2398_v27 }
 0x40a   : > { %v2521_v46 = vmax.f32 %v2489_v29, 0.0  ;;  %v2490_v33 = vadd.f32 %v2800_v3, %v2390_v4 }
 0x40b   : > { %2555 = vst [vmem:[%s4717_s17 + $0x50] sm:$0xff] %v2523_v12  ;;  %v2524_v45 = vmax.f32 %v2492_v54, 0.0 }
 0x40c   : > { %2553 = vst [vmem:[%s4717_s17 + $0x40] sm:$0xff] %v2521_v46  ;;  %v2522_v6 = vmax.f32 %v2490_v33, 0.0  ;;  %v3160_v13 = vpop.f32.mrb[60].mxu0  ;;  %v2817_v33 = vld [vmem:[%s3813_s30 + $0xe0] sm:$0xff] }
 0x40d   : > { %2556 = vst [vmem:[%s4717_s17 + $0x58] sm:$0xff] %v2524_v45  ;;  %v2411_v35 = vadd.f32 %v3160_v13, %v4706_v51  ;;  %v2402_v42 = vpop.f32.mrb[61].mxu0 }
 0x40e   : > { %2554 = vst [vmem:[%s4717_s17 + $0x48] sm:$0xff] %v2522_v6  ;;  %v2403_v7 = vadd.f32 %v4706_v51, %v2402_v42  ;;  %v3161_v8 = vpop.f32.mrb[62].mxu0 }
 0x40f   : > { %v2495_v11 = vadd.f32 %v2805_v9, %v2411_v35  ;;  %v2414_v43 = vadd.f32 %v3161_v8, %v4706_v51  ;;  %v2405_v21 = vpop.f32.mrb[63].mxu0  ;;  %v2815_v9 = vld [vmem:[%s3813_s30 + $0xd0] sm:$0xff]  ;;  %v2816_v8 = vld [vmem:[%s3813_s30 + $0xd8] sm:$0xff] }
 0x410   : > { %v2493_v0 = vadd.f32 %v2803_v10, %v2403_v7  ;;  %v2406_v31 = vadd.f32 %v4706_v51, %v2405_v21  ;;  %v2818_v10 = vld [vmem:[%s3813_s30 + $0xe8] sm:$0xff] }
 0x411   : > { %v2527_v36 = vmax.f32 %v2495_v11, 0.0  ;;  %v2496_v19 = vadd.f32 %v2806_v34, %v2414_v43 }
 0x412   : > { %v2525_v48 = vmax.f32 %v2493_v0, 0.0  ;;  %v2494_v53 = vadd.f32 %v2804_v25, %v2406_v31 }
 0x413   : > { %2559 = vst [vmem:[%s4717_s17 + $0x70] sm:$0xff] %v2527_v36  ;;  %v2528_v55 = vmax.f32 %v2496_v19, 0.0 }
 0x414   : > { %2557 = vst [vmem:[%s4717_s17 + $0x60] sm:$0xff] %v2525_v48  ;;  %v2526_v56 = vmax.f32 %v2494_v53, 0.0  ;;  %v3164_v61 = vpop.f32.mrb[64].mxu0  ;;  %v2821_v53 = vld [vmem:[%s3813_s30 + $0x100] sm:$0xff] }
 0x415   : > { %2560 = vst [vmem:[%s4717_s17 + $0x78] sm:$0xff] %v2528_v55  ;;  %v2427_v50 = vadd.f32 %v3164_v61, %v4706_v51  ;;  %v2418_v5 = vpop.f32.mrb[65].mxu0 }
 0x416   : > { %2558 = vst [vmem:[%s4717_s17 + $0x68] sm:$0xff] %v2526_v56  ;;  %v2419_v22 = vadd.f32 %v4706_v51, %v2418_v5  ;;  %v3165_v39 = vpop.f32.mrb[66].mxu0 }
 0x417   : > { %v2499_v47 = vadd.f32 %v2809_v17, %v2427_v50  ;;  %v2430_v62 = vadd.f32 %v3165_v39, %v4706_v51  ;;  %v2421_v23 = vpop.f32.mrb[67].mxu0  ;;  %v2819_v17 = vld [vmem:[%s3813_s30 + $0xf0] sm:$0xff]  ;;  %v2820_v39 = vld [vmem:[%s3813_s30 + $0xf8] sm:$0xff] }
 0x418   : > { %v2497_v26 = vadd.f32 %v2807_v58, %v2419_v22  ;;  %v2422_v18 = vadd.f32 %v4706_v51, %v2421_v23  ;;  %v2822_v58 = vld [vmem:[%s3813_s30 + $0x108] sm:$0xff]  ;;  %s4809_s30 = scalar_lea.hbm %s4870_s7, %s2847_s20 }
 0x419   : > { %v2531_v63 = vmax.f32 %v2499_v47, 0.0  ;;  %v2500_v32 = vadd.f32 %v2810_v37, %v2430_v62 }
 0x41a   : > { %v2529_v15 = vmax.f32 %v2497_v26, 0.0  ;;  %v2498_v38 = vadd.f32 %v2808_v52, %v2422_v18 }
 0x41b   : > { %2563 = vst [vmem:[%s4717_s17 + $0x90] sm:$0xff] %v2531_v63  ;;  %v2532_v30 = vmax.f32 %v2500_v32, 0.0 }
 0x41c   : > { %2561 = vst [vmem:[%s4717_s17 + $0x80] sm:$0xff] %v2529_v15  ;;  %v2530_v1 = vmax.f32 %v2498_v38, 0.0  ;;  %v3168_v24 = vpop.f32.mrb[68].mxu0 }
 0x41d   : > { %2564 = vst [vmem:[%s4717_s17 + $0x98] sm:$0xff] %v2532_v30  ;;  %v2443_v60 = vadd.f32 %v3168_v24, %v4706_v51  ;;  %v2434_v16 = vpop.f32.mrb[69].mxu0 }
 0x41e   : > { %2562 = vst [vmem:[%s4717_s17 + $0x88] sm:$0xff] %v2530_v1  ;;  %v2435_v14 = vadd.f32 %v4706_v51, %v2434_v16  ;;  %v3169_v40 = vpop.f32.mrb[70].mxu0 }
 0x41f   : > { %v2503_v20 = vadd.f32 %v2813_v49, %v2443_v60  ;;  %v2446_v59 = vadd.f32 %v3169_v40, %v4706_v51  ;;  %v2437_v57 = vpop.f32.mrb[71].mxu0 }
 0x420   : > { %v2501_v27 = vadd.f32 %v2811_v2, %v2435_v14  ;;  %v2438_v3 = vadd.f32 %v4706_v51, %v2437_v57 }
 0x421   : > { %v2535_v41 = vmax.f32 %v2503_v20, 0.0  ;;  %v2504_v29 = vadd.f32 %v2814_v44, %v2446_v59 }
 0x422   : > { %v2533_v4 = vmax.f32 %v2501_v27, 0.0  ;;  %v2502_v12 = vadd.f32 %v2812_v28, %v2438_v3 }
 0x423   : > { %2567 = vst [vmem:[%s4717_s17 + $0xb0] sm:$0xff] %v2535_v41  ;;  %v2536_v54 = vmax.f32 %v2504_v29, 0.0 }
 0x424   : > { %2565 = vst [vmem:[%s4717_s17 + $0xa0] sm:$0xff] %v2533_v4  ;;  %v2534_v46 = vmax.f32 %v2502_v12, 0.0  ;;  %v3172_v45 = vpop.f32.mrb[72].mxu0 }
 0x425   : > { %2568 = vst [vmem:[%s4717_s17 + $0xb8] sm:$0xff] %v2536_v54  ;;  %v2459_v6 = vadd.f32 %v3172_v45, %v4706_v51  ;;  %v2450_v13 = vpop.f32.mrb[73].mxu0 }
 0x426   : > { %2566 = vst [vmem:[%s4717_s17 + $0xa8] sm:$0xff] %v2534_v46  ;;  %v2451_v35 = vadd.f32 %v4706_v51, %v2450_v13  ;;  %v3173_v42 = vpop.f32.mrb[74].mxu0 }
 0x427   : > { %v2507_v7 = vadd.f32 %v2817_v33, %v2459_v6  ;;  %v2462_v34 = vadd.f32 %v3173_v42, %v4706_v51  ;;  %v2453_v11 = vpop.f32.mrb[75].mxu0 }
 0x428   : > { %v2505_v43 = vadd.f32 %v2815_v9, %v2451_v35  ;;  %v2454_v25 = vadd.f32 %v4706_v51, %v2453_v11 }
 0x429   : > { %v2539_v21 = vmax.f32 %v2507_v7, 0.0  ;;  %v2508_v0 = vadd.f32 %v2818_v10, %v2462_v34 }
 0x42a   : > { %v2537_v31 = vmax.f32 %v2505_v43, 0.0  ;;  %v2506_v36 = vadd.f32 %v2816_v8, %v2454_v25 }
 0x42b   : > { %2571 = vst [vmem:[%s4717_s17 + $0xd0] sm:$0xff] %v2539_v21  ;;  %v2540_v19 = vmax.f32 %v2508_v0, 0.0 }
 0x42c   : > { %2569 = vst [vmem:[%s4717_s17 + $0xc0] sm:$0xff] %v2537_v31  ;;  %v2538_v48 = vmax.f32 %v2506_v36, 0.0  ;;  %v3176_v55 = vpop.f32.mrb[76].mxu0 }
 0x42d   : > { %2572 = vst [vmem:[%s4717_s17 + $0xd8] sm:$0xff] %v2540_v19  ;;  %v2475_v56 = vadd.f32 %v3176_v55, %v4706_v51  ;;  %v2466_v61 = vpop.f32.mrb[77].mxu0 }
 0x42e   : > { %2570 = vst [vmem:[%s4717_s17 + $0xc8] sm:$0xff] %v2538_v48  ;;  %v2467_v50 = vadd.f32 %v4706_v51, %v2466_v61  ;;  %v3177_v5 = vpop.f32.mrb[78].mxu0 }
 0x42f   : > { %v2511_v22 = vadd.f32 %v2821_v53, %v2475_v56  ;;  %v2478_v37 = vadd.f32 %v3177_v5, %v4706_v51  ;;  %v2469_v47 = vpop.f32.mrb[79].mxu0 }
 0x430   : > { %v2509_v62 = vadd.f32 %v2819_v17, %v2467_v50  ;;  %v2470_v52 = vadd.f32 %v4706_v51, %v2469_v47 }
 0x431   : > { %v2543_v23 = vmax.f32 %v2511_v22, 0.0  ;;  %v2512_v26 = vadd.f32 %v2822_v58, %v2478_v37 }
 0x432   : > { %v2541_v18 = vmax.f32 %v2509_v62, 0.0  ;;  %v2510_v63 = vadd.f32 %v2820_v39, %v2470_v52 }
 0x433   : > { %2575 = vst [vmem:[%s4717_s17 + $0xf0] sm:$0xff] %v2543_v23  ;;  %v2544_v32 = vmax.f32 %v2512_v26, 0.0 }
 0x434   : > { %2573 = vst [vmem:[%s4717_s17 + $0xe0] sm:$0xff] %v2541_v18  ;;  %v2542_v51 = vmax.f32 %v2510_v63, 0.0 }
 0x435   : > { %2576 = vst [vmem:[%s4717_s17 + $0xf8] sm:$0xff] %v2544_v32 }
 0x436   : > { %2574 = vst [vmem:[%s4717_s17 + $0xe8] sm:$0xff] %v2542_v51 }
 0x437   : > { %3577 = shalt.err (!%p3574_p4)
}
 0x438   : > { %s3578_s21 = scalar_lea.hbm %s4809_s30, 4096  ;;  %s3582_s20 = scalar_lea.hbm %s4870_s7, 8192 }
 0x439   : > { %p3579_p6 = scmp.ne.s32.totalorder %s4809_s30, %s3578_s21  ;;  %p3583_p12 = scmp.lt.u32.totalorder %s4809_s30, %s4870_s7 }
 0x43a   : > { %p3584_p1 = scmp.lt.u32.totalorder %s3582_s20, %s3578_s21  ;;  %p3586_p8 = scmp.lt.u32.totalorder %s3578_s21, %s4809_s30 }
 0x43b   : > { %p3580_p7 = pnand %p3579_p6, %p4914_p9 }
 0x43c   : > { %p3585_p3 = por %p3584_p1, %p3583_p12 }
 0x43d   : > { %p3581_p10 = pneg %p3580_p7 }
 0x43e   : > { %p3587_p11 = por %p3586_p8, %p3585_p3 }
 0x440   : > { %p3588_p0 = pnand %p3587_p11, %p3581_p10 }
 0x442   : > { %3591 = shalt.err (!%p3588_p0)
}
 0x443   : > { %s3655_s12 = smov 128   ;;  %s3656_s19 = smov 8  }
 0x444   : > { %3259 = dma.vmem_to_hbm [thread:$0]  (%p4914_p9), %s4811_s23, 4096, %s4809_s30, %s2578_s27, %s3655_s12, %s3655_s12, %s3656_s19  }
 0x445 PF: > { %s2609_s13 = sand.u32 1, %s3626_s24   ;;  %p4915_p5 = scmp.ne.s32.totalorder %s4875_s16, 0 }
 0x446   : > { %p4916_p13 = scmp.ge.s32.totalorder %s3646_s29, 2  ;;  %s2610_s11 = scalar_lea.sflag [#allocation4], %s2609_s13 }
 0x448   : > { %p3266_p2 = pnand %p4916_p13, %p4915_p5 }
 0x44a   : > { %3621 = dma.done.wait (!%p3266_p2), %s2610_s11, 4096  }
 0x44b   : > { %3623 = vsyncadd (!%p3266_p2), %s2610_s11, 4294963200  ;;  %s23_s29 = sadd.s32 1, %s3646_s29   ;;  %s4917_s24 = smov %s3630_s25 }
 0x44c   : > { %p20_p4 = scmp.ge.s32.totalorder %s23_s29, 4   ;;  %s4918_s25 = smov %s3634_s26 }
 0x44d   : > { %s4919_s26 = smov %s3753_s15  ;;  %s4920_s27 = smov %s3642_s28 }
 0x44e   : > { %s4921_s28 = smov %s4923_s9  ;;  %22 = sbr.rel (!%p20_p4) target bundleno = 6 (0x6), region = 97 }
 0x455   :  { %2615 = vsyncpa [#allocation3], 1 }
 0x456   :  { %2617 = vsyncpa [#allocation3 + $0x1], 1 }
 0x457   :  { %2618 = vsyncpa [#allocation4], 1 }
 0x458   :  { %2620 = vsyncpa [#allocation4 + $0x1], 1 }

</bundles_post_ra>
